<compile_context>
chip_gen: v5e
topology: v5e:2x2
jax: 0.10.0
libtpu: 0.0.40
codegen_flags: <defaults>
</compile_context>

<pallas_src>
import functools

import jax
import jax.numpy as jnp
from jax import lax
from jax.experimental import pallas as pl
from jax.experimental.pallas import tpu as pltpu


def bilstm_kernel(xg_ref, whh_ref, out_ref, hn_ref, cn_ref):
    """Fused bidirectional LSTM recurrence.

    xg_ref : (T, Bb, 8H) f32  precomputed input gates
             [:, :, :4H] = x_t       @ W_ih_f + b_f   (forward,  time t)
             [:, :, 4H:] = x_{T-1-t} @ W_ih_b + b_b   (backward, already reversed)
    whh_ref: (2H, 8H)         block-diagonal recurrent weights
             [:H, :4H] = W_hh_f ; [H:, 4H:] = W_hh_b ; zeros elsewhere
    out_ref: (T, Bb, 2H) f32  fused output (fwd | bwd), time-leading
    hn_ref : (2, Bb, H)  f32  final hidden states (fwd, bwd)
    cn_ref : (2, Bb, H)  f32  final cell states   (fwd, bwd)
    """
    T, Bb, _ = xg_ref.shape
    H = whh_ref.shape[0] // 2
    whh = whh_ref[...]                 # hoisted: stays resident across the loop

    def half(g4, c):
        # torch.nn.LSTM gate order: i, f, g, o
        i = jax.nn.sigmoid(g4[:, 0 * H:1 * H])
        f = jax.nn.sigmoid(g4[:, 1 * H:2 * H])
        g = jnp.tanh(g4[:, 2 * H:3 * H])
        o = jax.nn.sigmoid(g4[:, 3 * H:4 * H])
        c_new = f * c + i * g
        return o * jnp.tanh(c_new), c_new

    def step(t, carry):
        h_f, h_b, c_f, c_b = carry
        h_cat = jnp.concatenate([h_f, h_b], axis=-1)              # (Bb, 2H)
        # single MXU matmul per step for both directions (f32 accumulation)
        gates = xg_ref[t] + jnp.dot(h_cat.astype(whh.dtype), whh,
                                    preferred_element_type=jnp.float32)
        h_f, c_f = half(gates[:, :4 * H], c_f)
        h_b, c_b = half(gates[:, 4 * H:], c_b)
        out_ref[t, :, 0:H] = h_f                   # forward state for time t
        out_ref[T - 1 - t, :, H:2 * H] = h_b       # backward state for time T-1-t
        return h_f, h_b, c_f, c_b

    z = jnp.zeros((Bb, H), jnp.float32)
    h_f, h_b, c_f, c_b = lax.fori_loop(0, T, step, (z, z, z, z), unroll=True)
    hn_ref[0] = h_f
    hn_ref[1] = h_b
    cn_ref[0] = c_f
    cn_ref[1] = c_b


@functools.partial(jax.jit, static_argnames=("use_bf16_matmul",))
def bilstm_encoder(x, params, use_bf16_matmul=False):
    """Pallas BiLSTM forward. Returns (output[B,T,2H], (h_n[2,B,H], c_n[2,B,H]))."""
    B, T, IN = x.shape
    H = params["whh_f"].shape[0]
    mm_dtype = jnp.bfloat16 if use_bf16_matmul else jnp.float32

    # ---- hoisted input projection: one big MXU-friendly matmul (XLA side) ----
    wih_cat = jnp.concatenate([params["wih_f"], params["wih_b"]], axis=1)   # (IN, 8H)
    b_cat = jnp.concatenate([params["b_f"], params["b_b"]], axis=1)         # (1, 8H)
    xg = jnp.dot(x.reshape(B * T, IN).astype(mm_dtype), wih_cat.astype(mm_dtype),
                 preferred_element_type=jnp.float32) + b_cat
    xg = xg.reshape(B, T, 8 * H)
    # reverse the backward half in time and go time-leading: (T, B, 8H)
    xg = jnp.concatenate([xg[:, :, :4 * H], xg[:, ::-1, 4 * H:]], axis=-1)
    xg = jnp.transpose(xg, (1, 0, 2))

    # ---- block-diagonal recurrent weights: one matmul/step for both dirs ----
    whh_blk = jnp.zeros((2 * H, 8 * H), jnp.float32)
    whh_blk = whh_blk.at[:H, :4 * H].set(params["whh_f"])
    whh_blk = whh_blk.at[H:, 4 * H:].set(params["whh_b"])
    whh_blk = whh_blk.astype(mm_dtype)

    # batch tiling: full batch if small, else 8-sublane tiles (parallel grid axis)
    bb = B if (B < 8 or B % 8 != 0) else 8
    grid = (pl.cdiv(B, bb),)

    out_tbh, h_n, c_n = pl.pallas_call(
        bilstm_kernel,
        out_shape=(
            jax.ShapeDtypeStruct((T, B, 2 * H), jnp.float32),
            jax.ShapeDtypeStruct((2, B, H), jnp.float32),
            jax.ShapeDtypeStruct((2, B, H), jnp.float32),
        ),
        grid=grid,
        in_specs=[
            pl.BlockSpec((T, bb, 8 * H), lambda i: (0, i, 0)),
            pl.BlockSpec((2 * H, 8 * H), lambda i: (0, 0)),
        ],
        out_specs=(
            pl.BlockSpec((T, bb, 2 * H), lambda i: (0, i, 0)),
            pl.BlockSpec((2, bb, H), lambda i: (0, i, 0)),
            pl.BlockSpec((2, bb, H), lambda i: (0, i, 0)),
        ),
        compiler_params=pltpu.CompilerParams(
            dimension_semantics=("parallel",)),
    )(xg, whh_blk)

    output = jnp.transpose(out_tbh, (1, 0, 2))    # (B, T, 2H), batch_first
    return output, (h_n, c_n)


# ---------------- pure-JAX reference (for correctness check) ----------------
def bilstm_reference(x, params):
    B, T, _ = x.shape
    H = params["whh_f"].shape[0]

    def cell(x_t, h, c, wih, whh, b):
        gates = x_t @ wih + h @ whh + b
        i = jax.nn.sigmoid(gates[:, 0 * H:1 * H])
        f = jax.nn.sigmoid(gates[:, 1 * H:2 * H])
        g = jnp.tanh(gates[:, 2 * H:3 * H])
        o = jax.nn.sigmoid(gates[:, 3 * H:4 * H])
        c_new = f * c + i * g
        return o * jnp.tanh(c_new), c_new

    def run_dir(wih, whh, b, reverse):
        h = jnp.zeros((B, H), jnp.float32)
        c = jnp.zeros((B, H), jnp.float32)
        order = range(T - 1, -1, -1) if reverse else range(T)
        outs = [None] * T
        for t in order:
            h, c = cell(x[:, t, :], h, c, wih, whh, b)
            outs[t] = h
        return jnp.stack(outs, axis=1), h, c

    of, hf, cf = run_dir(params["wih_f"], params["whh_f"], params["b_f"], False)
    ob, hb, cb = run_dir(params["wih_b"], params["whh_b"], params["b_b"], True)
    return (jnp.concatenate([of, ob], axis=-1),
            (jnp.stack([hf, hb], axis=0), jnp.stack([cf, cb], axis=0)))


def init_params(key, in_feature, hidden):
    # torch.nn.LSTM init: U(-1/sqrt(H), 1/sqrt(H)); b_ih + b_hh folded (independent keys).
    k = 1.0 / (hidden ** 0.5)
    keys = jax.random.split(key, 8)
    u = lambda kk, shape: jax.random.uniform(kk, shape, jnp.float32, -k, k)
    return {
        "wih_f": u(keys[0], (in_feature, 4 * hidden)),
        "whh_f": u(keys[1], (hidden, 4 * hidden)),
        "b_f":   u(keys[2], (1, 4 * hidden)) + u(keys[3], (1, 4 * hidden)),
        "wih_b": u(keys[4], (in_feature, 4 * hidden)),
        "whh_b": u(keys[5], (hidden, 4 * hidden)),
        "b_b":   u(keys[6], (1, 4 * hidden)) + u(keys[7], (1, 4 * hidden)),
    }


if __name__ == "__main__":
    B, T = 2, 8            # batch, seq_len
    IN_FEATURE = 16        # LSTM input_size
    HIDDEN = 32            # LSTM hidden_size (out_feature)

    key = jax.random.PRNGKey(0)
    k_x, k_p = jax.random.split(key)
    x = jax.random.normal(k_x, (B, T, IN_FEATURE), jnp.float32)
    params = init_params(k_p, IN_FEATURE, HIDDEN)

    # f32 path (exact PyTorch semantics)
    output, (h_n, c_n) = bilstm_encoder(x, params)
    jax.block_until_ready((output, h_n, c_n))

    ref_out, (ref_h, ref_c) = bilstm_reference(x, params)

    assert output.shape == (B, T, 2 * HIDDEN)
    assert h_n.shape == (2, B, HIDDEN) and c_n.shape == (2, B, HIDDEN)
    assert jnp.allclose(output, ref_out, rtol=1e-5, atol=1e-5)
    assert jnp.allclose(h_n, ref_h, rtol=1e-5, atol=1e-5)
    assert jnp.allclose(c_n, ref_c, rtol=1e-5, atol=1e-5)

    # bf16-MXU path (v6e/v7x fast path): same structure, looser tolerance.
    out16, (h16, c16) = bilstm_encoder(x, params, use_bf16_matmul=True)
    jax.block_until_ready((out16, h16, c16))
    assert jnp.allclose(out16, ref_out, rtol=3e-2, atol=3e-2)
    assert jnp.allclose(h16, ref_h, rtol=3e-2, atol=3e-2)
    assert jnp.allclose(c16, ref_c, rtol=3e-2, atol=3e-2)

    print("KERNEL_OK")
</pallas_src>

<mosaic_0001>
module attributes {stable_mosaic.version = 11 : i64} {
  func.func @bilstm_kernel(%arg0: i32, %arg1: memref<8x2x256xf32, #tpu.memory_space<vmem>>, %arg2: memref<64x256xf32, #tpu.memory_space<vmem>>, %arg3: memref<8x2x64xf32, #tpu.memory_space<vmem>>, %arg4: memref<2x2x32xf32, #tpu.memory_space<vmem>>, %arg5: memref<2x2x32xf32, #tpu.memory_space<vmem>>) attributes {dimension_semantics = [#tpu.dimension_semantics<parallel>], iteration_bounds = array<i64: 1>, scalar_prefetch = 0 : i64, scratch_operands = 0 : i64, tpu.core_type = #tpu.core_type<tc>, window_params = [{transform_indices = @transform_0, window_bounds = array<i64: 8, 2, 256>}, {pipeline_mode = #tpu.pipeline_mode<synchronous>, transform_indices = @transform_1, window_bounds = array<i64: 64, 256>}, {transform_indices = @transform_2, window_bounds = array<i64: 8, 2, 64>}, {transform_indices = @transform_3, window_bounds = array<i64: 2, 2, 32>}, {transform_indices = @transform_4, window_bounds = array<i64: 2, 2, 32>}]} {
    %c0 = arith.constant 0 : index
    %c0_0 = arith.constant 0 : index
    %0 = vector.load %arg2[%c0, %c0_0] : memref<64x256xf32, #tpu.memory_space<vmem>>, vector<64x256xf32>
    %cst = arith.constant 0.000000e+00 : f32
    %1 = vector.broadcast %cst : f32 to vector<2x32xf32>
    %c0_i32 = arith.constant 0 : i32
    %2 = tpu.concatenate %1, %1 in 1 : vector<2x32xf32>, vector<2x32xf32> -> vector<2x64xf32>
    %3 = arith.index_cast %c0_i32 : i32 to index
    %c0_1 = arith.constant 0 : index
    %c0_2 = arith.constant 0 : index
    %4 = vector.load %arg1[%3, %c0_1, %c0_2] : memref<8x2x256xf32, #tpu.memory_space<vmem>>, vector<1x2x256xf32>
    %5 = vector.shape_cast %4 : vector<1x2x256xf32> to vector<2x256xf32>
    %cst_3 = arith.constant dense<0.000000e+00> : vector<2x256xf32>
    %6 = tpu.matmul %2, %0, %cst_3 {dimension_numbers = #tpu.dot_dimension_numbers<[1], [0], [0], [1], [0, 0, 1, 1], [], []>} : vector<2x64xf32>, vector<64x256xf32>, vector<2x256xf32> -> vector<2x256xf32>
    %7 = arith.addf %5, %6 : vector<2x256xf32>
    %8 = vector.extract_strided_slice %7 {offsets = [0, 0], sizes = [2, 128], strides = [1, 1]} : vector<2x256xf32> to vector<2x128xf32>
    %9 = vector.extract_strided_slice %8 {offsets = [0, 0], sizes = [2, 32], strides = [1, 1]} : vector<2x128xf32> to vector<2x32xf32>
    %10 = arith.negf %9 : vector<2x32xf32>
    %11 = math.exp %10 : vector<2x32xf32>
    %cst_4 = arith.constant 1.000000e+00 : f32
    %12 = vector.broadcast %cst_4 : f32 to vector<2x32xf32>
    %13 = arith.addf %12, %11 : vector<2x32xf32>
    %14 = arith.divf %12, %13 : vector<2x32xf32>
    %15 = vector.extract_strided_slice %8 {offsets = [0, 32], sizes = [2, 32], strides = [1, 1]} : vector<2x128xf32> to vector<2x32xf32>
    %16 = arith.negf %15 : vector<2x32xf32>
    %17 = math.exp %16 : vector<2x32xf32>
    %cst_5 = arith.constant 1.000000e+00 : f32
    %18 = vector.broadcast %cst_5 : f32 to vector<2x32xf32>
    %19 = arith.addf %18, %17 : vector<2x32xf32>
    %20 = arith.divf %18, %19 : vector<2x32xf32>
    %21 = vector.extract_strided_slice %8 {offsets = [0, 64], sizes = [2, 32], strides = [1, 1]} : vector<2x128xf32> to vector<2x32xf32>
    %22 = math.tanh %21 : vector<2x32xf32>
    %23 = vector.extract_strided_slice %8 {offsets = [0, 96], sizes = [2, 32], strides = [1, 1]} : vector<2x128xf32> to vector<2x32xf32>
    %24 = arith.negf %23 : vector<2x32xf32>
    %25 = math.exp %24 : vector<2x32xf32>
    %cst_6 = arith.constant 1.000000e+00 : f32
    %26 = vector.broadcast %cst_6 : f32 to vector<2x32xf32>
    %27 = arith.addf %26, %25 : vector<2x32xf32>
    %28 = arith.divf %26, %27 : vector<2x32xf32>
    %29 = arith.mulf %20, %1 : vector<2x32xf32>
    %30 = arith.mulf %14, %22 : vector<2x32xf32>
    %31 = arith.addf %29, %30 : vector<2x32xf32>
    %32 = math.tanh %31 : vector<2x32xf32>
    %33 = arith.mulf %28, %32 : vector<2x32xf32>
    %34 = vector.extract_strided_slice %7 {offsets = [0, 128], sizes = [2, 128], strides = [1, 1]} : vector<2x256xf32> to vector<2x128xf32>
    %35 = vector.extract_strided_slice %34 {offsets = [0, 0], sizes = [2, 32], strides = [1, 1]} : vector<2x128xf32> to vector<2x32xf32>
    %36 = arith.negf %35 : vector<2x32xf32>
    %37 = math.exp %36 : vector<2x32xf32>
    %cst_7 = arith.constant 1.000000e+00 : f32
    %38 = vector.broadcast %cst_7 : f32 to vector<2x32xf32>
    %39 = arith.addf %38, %37 : vector<2x32xf32>
    %40 = arith.divf %38, %39 : vector<2x32xf32>
    %41 = vector.extract_strided_slice %34 {offsets = [0, 32], sizes = [2, 32], strides = [1, 1]} : vector<2x128xf32> to vector<2x32xf32>
    %42 = arith.negf %41 : vector<2x32xf32>
    %43 = math.exp %42 : vector<2x32xf32>
    %cst_8 = arith.constant 1.000000e+00 : f32
    %44 = vector.broadcast %cst_8 : f32 to vector<2x32xf32>
    %45 = arith.addf %44, %43 : vector<2x32xf32>
    %46 = arith.divf %44, %45 : vector<2x32xf32>
    %47 = vector.extract_strided_slice %34 {offsets = [0, 64], sizes = [2, 32], strides = [1, 1]} : vector<2x128xf32> to vector<2x32xf32>
    %48 = math.tanh %47 : vector<2x32xf32>
    %49 = vector.extract_strided_slice %34 {offsets = [0, 96], sizes = [2, 32], strides = [1, 1]} : vector<2x128xf32> to vector<2x32xf32>
    %50 = arith.negf %49 : vector<2x32xf32>
    %51 = math.exp %50 : vector<2x32xf32>
    %cst_9 = arith.constant 1.000000e+00 : f32
    %52 = vector.broadcast %cst_9 : f32 to vector<2x32xf32>
    %53 = arith.addf %52, %51 : vector<2x32xf32>
    %54 = arith.divf %52, %53 : vector<2x32xf32>
    %55 = arith.mulf %46, %1 : vector<2x32xf32>
    %56 = arith.mulf %40, %48 : vector<2x32xf32>
    %57 = arith.addf %55, %56 : vector<2x32xf32>
    %58 = math.tanh %57 : vector<2x32xf32>
    %59 = arith.mulf %54, %58 : vector<2x32xf32>
    %60 = arith.index_cast %c0_i32 : i32 to index
    %c0_10 = arith.constant 0 : index
    %c0_11 = arith.constant 0 : index
    %61 = vector.load %arg3[%60, %c0_10, %c0_11] : memref<8x2x64xf32, #tpu.memory_space<vmem>>, vector<1x2x32xf32>
    %62 = vector.shape_cast %61 : vector<1x2x32xf32> to vector<2x32xf32>
    %63 = vector.shape_cast %33 : vector<2x32xf32> to vector<1x2x32xf32>
    tpu.vector_store %arg3[%60, %c0_10, %c0_11], %63 {strides = array<i32>} : memref<8x2x64xf32, #tpu.memory_space<vmem>>, vector<1x2x32xf32>,
    %c7_i32 = arith.constant 7 : i32
    %64 = arith.subi %c7_i32, %c0_i32 : i32
    %65 = arith.index_cast %64 : i32 to index
    %c0_12 = arith.constant 0 : index
    %c32 = arith.constant 32 : index
    %66 = vector.load %arg3[%65, %c0_12, %c32] : memref<8x2x64xf32, #tpu.memory_space<vmem>>, vector<1x2x32xf32>
    %67 = vector.shape_cast %66 : vector<1x2x32xf32> to vector<2x32xf32>
    %68 = vector.shape_cast %59 : vector<2x32xf32> to vector<1x2x32xf32>
    tpu.vector_store %arg3[%65, %c0_12, %c32], %68 {strides = array<i32>} : memref<8x2x64xf32, #tpu.memory_space<vmem>>, vector<1x2x32xf32>,
    %c1_i32 = arith.constant 1 : i32
    %69 = tpu.concatenate %33, %59 in 1 : vector<2x32xf32>, vector<2x32xf32> -> vector<2x64xf32>
    %70 = arith.index_cast %c1_i32 : i32 to index
    %c0_13 = arith.constant 0 : index
    %c0_14 = arith.constant 0 : index
    %71 = vector.load %arg1[%70, %c0_13, %c0_14] : memref<8x2x256xf32, #tpu.memory_space<vmem>>, vector<1x2x256xf32>
    %72 = vector.shape_cast %71 : vector<1x2x256xf32> to vector<2x256xf32>
    %cst_15 = arith.constant dense<0.000000e+00> : vector<2x256xf32>
    %73 = tpu.matmul %69, %0, %cst_15 {dimension_numbers = #tpu.dot_dimension_numbers<[1], [0], [0], [1], [0, 0, 1, 1], [], []>} : vector<2x64xf32>, vector<64x256xf32>, vector<2x256xf32> -> vector<2x256xf32>
    %74 = arith.addf %72, %73 : vector<2x256xf32>
    %75 = vector.extract_strided_slice %74 {offsets = [0, 0], sizes = [2, 128], strides = [1, 1]} : vector<2x256xf32> to vector<2x128xf32>
    %76 = vector.extract_strided_slice %75 {offsets = [0, 0], sizes = [2, 32], strides = [1, 1]} : vector<2x128xf32> to vector<2x32xf32>
    %77 = arith.negf %76 : vector<2x32xf32>
    %78 = math.exp %77 : vector<2x32xf32>
    %cst_16 = arith.constant 1.000000e+00 : f32
    %79 = vector.broadcast %cst_16 : f32 to vector<2x32xf32>
    %80 = arith.addf %79, %78 : vector<2x32xf32>
    %81 = arith.divf %79, %80 : vector<2x32xf32>
    %82 = vector.extract_strided_slice %75 {offsets = [0, 32], sizes = [2, 32], strides = [1, 1]} : vector<2x128xf32> to vector<2x32xf32>
    %83 = arith.negf %82 : vector<2x32xf32>
    %84 = math.exp %83 : vector<2x32xf32>
    %cst_17 = arith.constant 1.000000e+00 : f32
    %85 = vector.broadcast %cst_17 : f32 to vector<2x32xf32>
    %86 = arith.addf %85, %84 : vector<2x32xf32>
    %87 = arith.divf %85, %86 : vector<2x32xf32>
    %88 = vector.extract_strided_slice %75 {offsets = [0, 64], sizes = [2, 32], strides = [1, 1]} : vector<2x128xf32> to vector<2x32xf32>
    %89 = math.tanh %88 : vector<2x32xf32>
    %90 = vector.extract_strided_slice %75 {offsets = [0, 96], sizes = [2, 32], strides = [1, 1]} : vector<2x128xf32> to vector<2x32xf32>
    %91 = arith.negf %90 : vector<2x32xf32>
    %92 = math.exp %91 : vector<2x32xf32>
    %cst_18 = arith.constant 1.000000e+00 : f32
    %93 = vector.broadcast %cst_18 : f32 to vector<2x32xf32>
    %94 = arith.addf %93, %92 : vector<2x32xf32>
    %95 = arith.divf %93, %94 : vector<2x32xf32>
    %96 = arith.mulf %87, %31 : vector<2x32xf32>
    %97 = arith.mulf %81, %89 : vector<2x32xf32>
    %98 = arith.addf %96, %97 : vector<2x32xf32>
    %99 = math.tanh %98 : vector<2x32xf32>
    %100 = arith.mulf %95, %99 : vector<2x32xf32>
    %101 = vector.extract_strided_slice %74 {offsets = [0, 128], sizes = [2, 128], strides = [1, 1]} : vector<2x256xf32> to vector<2x128xf32>
    %102 = vector.extract_strided_slice %101 {offsets = [0, 0], sizes = [2, 32], strides = [1, 1]} : vector<2x128xf32> to vector<2x32xf32>
    %103 = arith.negf %102 : vector<2x32xf32>
    %104 = math.exp %103 : vector<2x32xf32>
    %cst_19 = arith.constant 1.000000e+00 : f32
    %105 = vector.broadcast %cst_19 : f32 to vector<2x32xf32>
    %106 = arith.addf %105, %104 : vector<2x32xf32>
    %107 = arith.divf %105, %106 : vector<2x32xf32>
    %108 = vector.extract_strided_slice %101 {offsets = [0, 32], sizes = [2, 32], strides = [1, 1]} : vector<2x128xf32> to vector<2x32xf32>
    %109 = arith.negf %108 : vector<2x32xf32>
    %110 = math.exp %109 : vector<2x32xf32>
    %cst_20 = arith.constant 1.000000e+00 : f32
    %111 = vector.broadcast %cst_20 : f32 to vector<2x32xf32>
    %112 = arith.addf %111, %110 : vector<2x32xf32>
    %113 = arith.divf %111, %112 : vector<2x32xf32>
    %114 = vector.extract_strided_slice %101 {offsets = [0, 64], sizes = [2, 32], strides = [1, 1]} : vector<2x128xf32> to vector<2x32xf32>
    %115 = math.tanh %114 : vector<2x32xf32>
    %116 = vector.extract_strided_slice %101 {offsets = [0, 96], sizes = [2, 32], strides = [1, 1]} : vector<2x128xf32> to vector<2x32xf32>
    %117 = arith.negf %116 : vector<2x32xf32>
    %118 = math.exp %117 : vector<2x32xf32>
    %cst_21 = arith.constant 1.000000e+00 : f32
    %119 = vector.broadcast %cst_21 : f32 to vector<2x32xf32>
    %120 = arith.addf %119, %118 : vector<2x32xf32>
    %121 = arith.divf %119, %120 : vector<2x32xf32>
    %122 = arith.mulf %113, %57 : vector<2x32xf32>
    %123 = arith.mulf %107, %115 : vector<2x32xf32>
    %124 = arith.addf %122, %123 : vector<2x32xf32>
    %125 = math.tanh %124 : vector<2x32xf32>
    %126 = arith.mulf %121, %125 : vector<2x32xf32>
    %127 = arith.index_cast %c1_i32 : i32 to index
    %c0_22 = arith.constant 0 : index
    %c0_23 = arith.constant 0 : index
    %128 = vector.load %arg3[%127, %c0_22, %c0_23] : memref<8x2x64xf32, #tpu.memory_space<vmem>>, vector<1x2x32xf32>
    %129 = vector.shape_cast %128 : vector<1x2x32xf32> to vector<2x32xf32>
    %130 = vector.shape_cast %100 : vector<2x32xf32> to vector<1x2x32xf32>
    tpu.vector_store %arg3[%127, %c0_22, %c0_23], %130 {strides = array<i32>} : memref<8x2x64xf32, #tpu.memory_space<vmem>>, vector<1x2x32xf32>,
    %c7_i32_24 = arith.constant 7 : i32
    %131 = arith.subi %c7_i32_24, %c1_i32 : i32
    %132 = arith.index_cast %131 : i32 to index
    %c0_25 = arith.constant 0 : index
    %c32_26 = arith.constant 32 : index
    %133 = vector.load %arg3[%132, %c0_25, %c32_26] : memref<8x2x64xf32, #tpu.memory_space<vmem>>, vector<1x2x32xf32>
    %134 = vector.shape_cast %133 : vector<1x2x32xf32> to vector<2x32xf32>
    %135 = vector.shape_cast %126 : vector<2x32xf32> to vector<1x2x32xf32>
    tpu.vector_store %arg3[%132, %c0_25, %c32_26], %135 {strides = array<i32>} : memref<8x2x64xf32, #tpu.memory_space<vmem>>, vector<1x2x32xf32>,
    %c2_i32 = arith.constant 2 : i32
    %136 = tpu.concatenate %100, %126 in 1 : vector<2x32xf32>, vector<2x32xf32> -> vector<2x64xf32>
    %137 = arith.index_cast %c2_i32 : i32 to index
    %c0_27 = arith.constant 0 : index
    %c0_28 = arith.constant 0 : index
    %138 = vector.load %arg1[%137, %c0_27, %c0_28] : memref<8x2x256xf32, #tpu.memory_space<vmem>>, vector<1x2x256xf32>
    %139 = vector.shape_cast %138 : vector<1x2x256xf32> to vector<2x256xf32>
    %cst_29 = arith.constant dense<0.000000e+00> : vector<2x256xf32>
    %140 = tpu.matmul %136, %0, %cst_29 {dimension_numbers = #tpu.dot_dimension_numbers<[1], [0], [0], [1], [0, 0, 1, 1], [], []>} : vector<2x64xf32>, vector<64x256xf32>, vector<2x256xf32> -> vector<2x256xf32>
    %141 = arith.addf %139, %140 : vector<2x256xf32>
    %142 = vector.extract_strided_slice %141 {offsets = [0, 0], sizes = [2, 128], strides = [1, 1]} : vector<2x256xf32> to vector<2x128xf32>
    %143 = vector.extract_strided_slice %142 {offsets = [0, 0], sizes = [2, 32], strides = [1, 1]} : vector<2x128xf32> to vector<2x32xf32>
    %144 = arith.negf %143 : vector<2x32xf32>
    %145 = math.exp %144 : vector<2x32xf32>
    %cst_30 = arith.constant 1.000000e+00 : f32
    %146 = vector.broadcast %cst_30 : f32 to vector<2x32xf32>
    %147 = arith.addf %146, %145 : vector<2x32xf32>
    %148 = arith.divf %146, %147 : vector<2x32xf32>
    %149 = vector.extract_strided_slice %142 {offsets = [0, 32], sizes = [2, 32], strides = [1, 1]} : vector<2x128xf32> to vector<2x32xf32>
    %150 = arith.negf %149 : vector<2x32xf32>
    %151 = math.exp %150 : vector<2x32xf32>
    %cst_31 = arith.constant 1.000000e+00 : f32
    %152 = vector.broadcast %cst_31 : f32 to vector<2x32xf32>
    %153 = arith.addf %152, %151 : vector<2x32xf32>
    %154 = arith.divf %152, %153 : vector<2x32xf32>
    %155 = vector.extract_strided_slice %142 {offsets = [0, 64], sizes = [2, 32], strides = [1, 1]} : vector<2x128xf32> to vector<2x32xf32>
    %156 = math.tanh %155 : vector<2x32xf32>
    %157 = vector.extract_strided_slice %142 {offsets = [0, 96], sizes = [2, 32], strides = [1, 1]} : vector<2x128xf32> to vector<2x32xf32>
    %158 = arith.negf %157 : vector<2x32xf32>
    %159 = math.exp %158 : vector<2x32xf32>
    %cst_32 = arith.constant 1.000000e+00 : f32
    %160 = vector.broadcast %cst_32 : f32 to vector<2x32xf32>
    %161 = arith.addf %160, %159 : vector<2x32xf32>
    %162 = arith.divf %160, %161 : vector<2x32xf32>
    %163 = arith.mulf %154, %98 : vector<2x32xf32>
    %164 = arith.mulf %148, %156 : vector<2x32xf32>
    %165 = arith.addf %163, %164 : vector<2x32xf32>
    %166 = math.tanh %165 : vector<2x32xf32>
    %167 = arith.mulf %162, %166 : vector<2x32xf32>
    %168 = vector.extract_strided_slice %141 {offsets = [0, 128], sizes = [2, 128], strides = [1, 1]} : vector<2x256xf32> to vector<2x128xf32>
    %169 = vector.extract_strided_slice %168 {offsets = [0, 0], sizes = [2, 32], strides = [1, 1]} : vector<2x128xf32> to vector<2x32xf32>
    %170 = arith.negf %169 : vector<2x32xf32>
    %171 = math.exp %170 : vector<2x32xf32>
    %cst_33 = arith.constant 1.000000e+00 : f32
    %172 = vector.broadcast %cst_33 : f32 to vector<2x32xf32>
    %173 = arith.addf %172, %171 : vector<2x32xf32>
    %174 = arith.divf %172, %173 : vector<2x32xf32>
    %175 = vector.extract_strided_slice %168 {offsets = [0, 32], sizes = [2, 32], strides = [1, 1]} : vector<2x128xf32> to vector<2x32xf32>
    %176 = arith.negf %175 : vector<2x32xf32>
    %177 = math.exp %176 : vector<2x32xf32>
    %cst_34 = arith.constant 1.000000e+00 : f32
    %178 = vector.broadcast %cst_34 : f32 to vector<2x32xf32>
    %179 = arith.addf %178, %177 : vector<2x32xf32>
    %180 = arith.divf %178, %179 : vector<2x32xf32>
    %181 = vector.extract_strided_slice %168 {offsets = [0, 64], sizes = [2, 32], strides = [1, 1]} : vector<2x128xf32> to vector<2x32xf32>
    %182 = math.tanh %181 : vector<2x32xf32>
    %183 = vector.extract_strided_slice %168 {offsets = [0, 96], sizes = [2, 32], strides = [1, 1]} : vector<2x128xf32> to vector<2x32xf32>
    %184 = arith.negf %183 : vector<2x32xf32>
    %185 = math.exp %184 : vector<2x32xf32>
    %cst_35 = arith.constant 1.000000e+00 : f32
    %186 = vector.broadcast %cst_35 : f32 to vector<2x32xf32>
    %187 = arith.addf %186, %185 : vector<2x32xf32>
    %188 = arith.divf %186, %187 : vector<2x32xf32>
    %189 = arith.mulf %180, %124 : vector<2x32xf32>
    %190 = arith.mulf %174, %182 : vector<2x32xf32>
    %191 = arith.addf %189, %190 : vector<2x32xf32>
    %192 = math.tanh %191 : vector<2x32xf32>
    %193 = arith.mulf %188, %192 : vector<2x32xf32>
    %194 = arith.index_cast %c2_i32 : i32 to index
    %c0_36 = arith.constant 0 : index
    %c0_37 = arith.constant 0 : index
    %195 = vector.load %arg3[%194, %c0_36, %c0_37] : memref<8x2x64xf32, #tpu.memory_space<vmem>>, vector<1x2x32xf32>
    %196 = vector.shape_cast %195 : vector<1x2x32xf32> to vector<2x32xf32>
    %197 = vector.shape_cast %167 : vector<2x32xf32> to vector<1x2x32xf32>
    tpu.vector_store %arg3[%194, %c0_36, %c0_37], %197 {strides = array<i32>} : memref<8x2x64xf32, #tpu.memory_space<vmem>>, vector<1x2x32xf32>,
    %c7_i32_38 = arith.constant 7 : i32
    %198 = arith.subi %c7_i32_38, %c2_i32 : i32
    %199 = arith.index_cast %198 : i32 to index
    %c0_39 = arith.constant 0 : index
    %c32_40 = arith.constant 32 : index
    %200 = vector.load %arg3[%199, %c0_39, %c32_40] : memref<8x2x64xf32, #tpu.memory_space<vmem>>, vector<1x2x32xf32>
    %201 = vector.shape_cast %200 : vector<1x2x32xf32> to vector<2x32xf32>
    %202 = vector.shape_cast %193 : vector<2x32xf32> to vector<1x2x32xf32>
    tpu.vector_store %arg3[%199, %c0_39, %c32_40], %202 {strides = array<i32>} : memref<8x2x64xf32, #tpu.memory_space<vmem>>, vector<1x2x32xf32>,
    %c3_i32 = arith.constant 3 : i32
    %203 = tpu.concatenate %167, %193 in 1 : vector<2x32xf32>, vector<2x32xf32> -> vector<2x64xf32>
    %204 = arith.index_cast %c3_i32 : i32 to index
    %c0_41 = arith.constant 0 : index
    %c0_42 = arith.constant 0 : index
    %205 = vector.load %arg1[%204, %c0_41, %c0_42] : memref<8x2x256xf32, #tpu.memory_space<vmem>>, vector<1x2x256xf32>
    %206 = vector.shape_cast %205 : vector<1x2x256xf32> to vector<2x256xf32>
    %cst_43 = arith.constant dense<0.000000e+00> : vector<2x256xf32>
    %207 = tpu.matmul %203, %0, %cst_43 {dimension_numbers = #tpu.dot_dimension_numbers<[1], [0], [0], [1], [0, 0, 1, 1], [], []>} : vector<2x64xf32>, vector<64x256xf32>, vector<2x256xf32> -> vector<2x256xf32>
    %208 = arith.addf %206, %207 : vector<2x256xf32>
    %209 = vector.extract_strided_slice %208 {offsets = [0, 0], sizes = [2, 128], strides = [1, 1]} : vector<2x256xf32> to vector<2x128xf32>
    %210 = vector.extract_strided_slice %209 {offsets = [0, 0], sizes = [2, 32], strides = [1, 1]} : vector<2x128xf32> to vector<2x32xf32>
    %211 = arith.negf %210 : vector<2x32xf32>
    %212 = math.exp %211 : vector<2x32xf32>
    %cst_44 = arith.constant 1.000000e+00 : f32
    %213 = vector.broadcast %cst_44 : f32 to vector<2x32xf32>
    %214 = arith.addf %213, %212 : vector<2x32xf32>
    %215 = arith.divf %213, %214 : vector<2x32xf32>
    %216 = vector.extract_strided_slice %209 {offsets = [0, 32], sizes = [2, 32], strides = [1, 1]} : vector<2x128xf32> to vector<2x32xf32>
    %217 = arith.negf %216 : vector<2x32xf32>
    %218 = math.exp %217 : vector<2x32xf32>
    %cst_45 = arith.constant 1.000000e+00 : f32
    %219 = vector.broadcast %cst_45 : f32 to vector<2x32xf32>
    %220 = arith.addf %219, %218 : vector<2x32xf32>
    %221 = arith.divf %219, %220 : vector<2x32xf32>
    %222 = vector.extract_strided_slice %209 {offsets = [0, 64], sizes = [2, 32], strides = [1, 1]} : vector<2x128xf32> to vector<2x32xf32>
    %223 = math.tanh %222 : vector<2x32xf32>
    %224 = vector.extract_strided_slice %209 {offsets = [0, 96], sizes = [2, 32], strides = [1, 1]} : vector<2x128xf32> to vector<2x32xf32>
    %225 = arith.negf %224 : vector<2x32xf32>
    %226 = math.exp %225 : vector<2x32xf32>
    %cst_46 = arith.constant 1.000000e+00 : f32
    %227 = vector.broadcast %cst_46 : f32 to vector<2x32xf32>
    %228 = arith.addf %227, %226 : vector<2x32xf32>
    %229 = arith.divf %227, %228 : vector<2x32xf32>
    %230 = arith.mulf %221, %165 : vector<2x32xf32>
    %231 = arith.mulf %215, %223 : vector<2x32xf32>
    %232 = arith.addf %230, %231 : vector<2x32xf32>
    %233 = math.tanh %232 : vector<2x32xf32>
    %234 = arith.mulf %229, %233 : vector<2x32xf32>
    %235 = vector.extract_strided_slice %208 {offsets = [0, 128], sizes = [2, 128], strides = [1, 1]} : vector<2x256xf32> to vector<2x128xf32>
    %236 = vector.extract_strided_slice %235 {offsets = [0, 0], sizes = [2, 32], strides = [1, 1]} : vector<2x128xf32> to vector<2x32xf32>
    %237 = arith.negf %236 : vector<2x32xf32>
    %238 = math.exp %237 : vector<2x32xf32>
    %cst_47 = arith.constant 1.000000e+00 : f32
    %239 = vector.broadcast %cst_47 : f32 to vector<2x32xf32>
    %240 = arith.addf %239, %238 : vector<2x32xf32>
    %241 = arith.divf %239, %240 : vector<2x32xf32>
    %242 = vector.extract_strided_slice %235 {offsets = [0, 32], sizes = [2, 32], strides = [1, 1]} : vector<2x128xf32> to vector<2x32xf32>
    %243 = arith.negf %242 : vector<2x32xf32>
    %244 = math.exp %243 : vector<2x32xf32>
    %cst_48 = arith.constant 1.000000e+00 : f32
    %245 = vector.broadcast %cst_48 : f32 to vector<2x32xf32>
    %246 = arith.addf %245, %244 : vector<2x32xf32>
    %247 = arith.divf %245, %246 : vector<2x32xf32>
    %248 = vector.extract_strided_slice %235 {offsets = [0, 64], sizes = [2, 32], strides = [1, 1]} : vector<2x128xf32> to vector<2x32xf32>
    %249 = math.tanh %248 : vector<2x32xf32>
    %250 = vector.extract_strided_slice %235 {offsets = [0, 96], sizes = [2, 32], strides = [1, 1]} : vector<2x128xf32> to vector<2x32xf32>
    %251 = arith.negf %250 : vector<2x32xf32>
    %252 = math.exp %251 : vector<2x32xf32>
    %cst_49 = arith.constant 1.000000e+00 : f32
    %253 = vector.broadcast %cst_49 : f32 to vector<2x32xf32>
    %254 = arith.addf %253, %252 : vector<2x32xf32>
    %255 = arith.divf %253, %254 : vector<2x32xf32>
    %256 = arith.mulf %247, %191 : vector<2x32xf32>
    %257 = arith.mulf %241, %249 : vector<2x32xf32>
    %258 = arith.addf %256, %257 : vector<2x32xf32>
    %259 = math.tanh %258 : vector<2x32xf32>
    %260 = arith.mulf %255, %259 : vector<2x32xf32>
    %261 = arith.index_cast %c3_i32 : i32 to index
    %c0_50 = arith.constant 0 : index
    %c0_51 = arith.constant 0 : index
    %262 = vector.load %arg3[%261, %c0_50, %c0_51] : memref<8x2x64xf32, #tpu.memory_space<vmem>>, vector<1x2x32xf32>
    %263 = vector.shape_cast %262 : vector<1x2x32xf32> to vector<2x32xf32>
    %264 = vector.shape_cast %234 : vector<2x32xf32> to vector<1x2x32xf32>
    tpu.vector_store %arg3[%261, %c0_50, %c0_51], %264 {strides = array<i32>} : memref<8x2x64xf32, #tpu.memory_space<vmem>>, vector<1x2x32xf32>,
    %c7_i32_52 = arith.constant 7 : i32
    %265 = arith.subi %c7_i32_52, %c3_i32 : i32
    %266 = arith.index_cast %265 : i32 to index
    %c0_53 = arith.constant 0 : index
    %c32_54 = arith.constant 32 : index
    %267 = vector.load %arg3[%266, %c0_53, %c32_54] : memref<8x2x64xf32, #tpu.memory_space<vmem>>, vector<1x2x32xf32>
    %268 = vector.shape_cast %267 : vector<1x2x32xf32> to vector<2x32xf32>
    %269 = vector.shape_cast %260 : vector<2x32xf32> to vector<1x2x32xf32>
    tpu.vector_store %arg3[%266, %c0_53, %c32_54], %269 {strides = array<i32>} : memref<8x2x64xf32, #tpu.memory_space<vmem>>, vector<1x2x32xf32>,
    %c4_i32 = arith.constant 4 : i32
    %270 = tpu.concatenate %234, %260 in 1 : vector<2x32xf32>, vector<2x32xf32> -> vector<2x64xf32>
    %271 = arith.index_cast %c4_i32 : i32 to index
    %c0_55 = arith.constant 0 : index
    %c0_56 = arith.constant 0 : index
    %272 = vector.load %arg1[%271, %c0_55, %c0_56] : memref<8x2x256xf32, #tpu.memory_space<vmem>>, vector<1x2x256xf32>
    %273 = vector.shape_cast %272 : vector<1x2x256xf32> to vector<2x256xf32>
    %cst_57 = arith.constant dense<0.000000e+00> : vector<2x256xf32>
    %274 = tpu.matmul %270, %0, %cst_57 {dimension_numbers = #tpu.dot_dimension_numbers<[1], [0], [0], [1], [0, 0, 1, 1], [], []>} : vector<2x64xf32>, vector<64x256xf32>, vector<2x256xf32> -> vector<2x256xf32>
    %275 = arith.addf %273, %274 : vector<2x256xf32>
    %276 = vector.extract_strided_slice %275 {offsets = [0, 0], sizes = [2, 128], strides = [1, 1]} : vector<2x256xf32> to vector<2x128xf32>
    %277 = vector.extract_strided_slice %276 {offsets = [0, 0], sizes = [2, 32], strides = [1, 1]} : vector<2x128xf32> to vector<2x32xf32>
    %278 = arith.negf %277 : vector<2x32xf32>
    %279 = math.exp %278 : vector<2x32xf32>
    %cst_58 = arith.constant 1.000000e+00 : f32
    %280 = vector.broadcast %cst_58 : f32 to vector<2x32xf32>
    %281 = arith.addf %280, %279 : vector<2x32xf32>
    %282 = arith.divf %280, %281 : vector<2x32xf32>
    %283 = vector.extract_strided_slice %276 {offsets = [0, 32], sizes = [2, 32], strides = [1, 1]} : vector<2x128xf32> to vector<2x32xf32>
    %284 = arith.negf %283 : vector<2x32xf32>
    %285 = math.exp %284 : vector<2x32xf32>
    %cst_59 = arith.constant 1.000000e+00 : f32
    %286 = vector.broadcast %cst_59 : f32 to vector<2x32xf32>
    %287 = arith.addf %286, %285 : vector<2x32xf32>
    %288 = arith.divf %286, %287 : vector<2x32xf32>
    %289 = vector.extract_strided_slice %276 {offsets = [0, 64], sizes = [2, 32], strides = [1, 1]} : vector<2x128xf32> to vector<2x32xf32>
    %290 = math.tanh %289 : vector<2x32xf32>
    %291 = vector.extract_strided_slice %276 {offsets = [0, 96], sizes = [2, 32], strides = [1, 1]} : vector<2x128xf32> to vector<2x32xf32>
    %292 = arith.negf %291 : vector<2x32xf32>
    %293 = math.exp %292 : vector<2x32xf32>
    %cst_60 = arith.constant 1.000000e+00 : f32
    %294 = vector.broadcast %cst_60 : f32 to vector<2x32xf32>
    %295 = arith.addf %294, %293 : vector<2x32xf32>
    %296 = arith.divf %294, %295 : vector<2x32xf32>
    %297 = arith.mulf %288, %232 : vector<2x32xf32>
    %298 = arith.mulf %282, %290 : vector<2x32xf32>
    %299 = arith.addf %297, %298 : vector<2x32xf32>
    %300 = math.tanh %299 : vector<2x32xf32>
    %301 = arith.mulf %296, %300 : vector<2x32xf32>
    %302 = vector.extract_strided_slice %275 {offsets = [0, 128], sizes = [2, 128], strides = [1, 1]} : vector<2x256xf32> to vector<2x128xf32>
    %303 = vector.extract_strided_slice %302 {offsets = [0, 0], sizes = [2, 32], strides = [1, 1]} : vector<2x128xf32> to vector<2x32xf32>
    %304 = arith.negf %303 : vector<2x32xf32>
    %305 = math.exp %304 : vector<2x32xf32>
    %cst_61 = arith.constant 1.000000e+00 : f32
    %306 = vector.broadcast %cst_61 : f32 to vector<2x32xf32>
    %307 = arith.addf %306, %305 : vector<2x32xf32>
    %308 = arith.divf %306, %307 : vector<2x32xf32>
    %309 = vector.extract_strided_slice %302 {offsets = [0, 32], sizes = [2, 32], strides = [1, 1]} : vector<2x128xf32> to vector<2x32xf32>
    %310 = arith.negf %309 : vector<2x32xf32>
    %311 = math.exp %310 : vector<2x32xf32>
    %cst_62 = arith.constant 1.000000e+00 : f32
    %312 = vector.broadcast %cst_62 : f32 to vector<2x32xf32>
    %313 = arith.addf %312, %311 : vector<2x32xf32>
    %314 = arith.divf %312, %313 : vector<2x32xf32>
    %315 = vector.extract_strided_slice %302 {offsets = [0, 64], sizes = [2, 32], strides = [1, 1]} : vector<2x128xf32> to vector<2x32xf32>
    %316 = math.tanh %315 : vector<2x32xf32>
    %317 = vector.extract_strided_slice %302 {offsets = [0, 96], sizes = [2, 32], strides = [1, 1]} : vector<2x128xf32> to vector<2x32xf32>
    %318 = arith.negf %317 : vector<2x32xf32>
    %319 = math.exp %318 : vector<2x32xf32>
    %cst_63 = arith.constant 1.000000e+00 : f32
    %320 = vector.broadcast %cst_63 : f32 to vector<2x32xf32>
    %321 = arith.addf %320, %319 : vector<2x32xf32>
    %322 = arith.divf %320, %321 : vector<2x32xf32>
    %323 = arith.mulf %314, %258 : vector<2x32xf32>
    %324 = arith.mulf %308, %316 : vector<2x32xf32>
    %325 = arith.addf %323, %324 : vector<2x32xf32>
    %326 = math.tanh %325 : vector<2x32xf32>
    %327 = arith.mulf %322, %326 : vector<2x32xf32>
    %328 = arith.index_cast %c4_i32 : i32 to index
    %c0_64 = arith.constant 0 : index
    %c0_65 = arith.constant 0 : index
    %329 = vector.load %arg3[%328, %c0_64, %c0_65] : memref<8x2x64xf32, #tpu.memory_space<vmem>>, vector<1x2x32xf32>
    %330 = vector.shape_cast %329 : vector<1x2x32xf32> to vector<2x32xf32>
    %331 = vector.shape_cast %301 : vector<2x32xf32> to vector<1x2x32xf32>
    tpu.vector_store %arg3[%328, %c0_64, %c0_65], %331 {strides = array<i32>} : memref<8x2x64xf32, #tpu.memory_space<vmem>>, vector<1x2x32xf32>,
    %c7_i32_66 = arith.constant 7 : i32
    %332 = arith.subi %c7_i32_66, %c4_i32 : i32
    %333 = arith.index_cast %332 : i32 to index
    %c0_67 = arith.constant 0 : index
    %c32_68 = arith.constant 32 : index
    %334 = vector.load %arg3[%333, %c0_67, %c32_68] : memref<8x2x64xf32, #tpu.memory_space<vmem>>, vector<1x2x32xf32>
    %335 = vector.shape_cast %334 : vector<1x2x32xf32> to vector<2x32xf32>
    %336 = vector.shape_cast %327 : vector<2x32xf32> to vector<1x2x32xf32>
    tpu.vector_store %arg3[%333, %c0_67, %c32_68], %336 {strides = array<i32>} : memref<8x2x64xf32, #tpu.memory_space<vmem>>, vector<1x2x32xf32>,
    %c5_i32 = arith.constant 5 : i32
    %337 = tpu.concatenate %301, %327 in 1 : vector<2x32xf32>, vector<2x32xf32> -> vector<2x64xf32>
    %338 = arith.index_cast %c5_i32 : i32 to index
    %c0_69 = arith.constant 0 : index
    %c0_70 = arith.constant 0 : index
    %339 = vector.load %arg1[%338, %c0_69, %c0_70] : memref<8x2x256xf32, #tpu.memory_space<vmem>>, vector<1x2x256xf32>
    %340 = vector.shape_cast %339 : vector<1x2x256xf32> to vector<2x256xf32>
    %cst_71 = arith.constant dense<0.000000e+00> : vector<2x256xf32>
    %341 = tpu.matmul %337, %0, %cst_71 {dimension_numbers = #tpu.dot_dimension_numbers<[1], [0], [0], [1], [0, 0, 1, 1], [], []>} : vector<2x64xf32>, vector<64x256xf32>, vector<2x256xf32> -> vector<2x256xf32>
    %342 = arith.addf %340, %341 : vector<2x256xf32>
    %343 = vector.extract_strided_slice %342 {offsets = [0, 0], sizes = [2, 128], strides = [1, 1]} : vector<2x256xf32> to vector<2x128xf32>
    %344 = vector.extract_strided_slice %343 {offsets = [0, 0], sizes = [2, 32], strides = [1, 1]} : vector<2x128xf32> to vector<2x32xf32>
    %345 = arith.negf %344 : vector<2x32xf32>
    %346 = math.exp %345 : vector<2x32xf32>
    %cst_72 = arith.constant 1.000000e+00 : f32
    %347 = vector.broadcast %cst_72 : f32 to vector<2x32xf32>
    %348 = arith.addf %347, %346 : vector<2x32xf32>
    %349 = arith.divf %347, %348 : vector<2x32xf32>
    %350 = vector.extract_strided_slice %343 {offsets = [0, 32], sizes = [2, 32], strides = [1, 1]} : vector<2x128xf32> to vector<2x32xf32>
    %351 = arith.negf %350 : vector<2x32xf32>
    %352 = math.exp %351 : vector<2x32xf32>
    %cst_73 = arith.constant 1.000000e+00 : f32
    %353 = vector.broadcast %cst_73 : f32 to vector<2x32xf32>
    %354 = arith.addf %353, %352 : vector<2x32xf32>
    %355 = arith.divf %353, %354 : vector<2x32xf32>
    %356 = vector.extract_strided_slice %343 {offsets = [0, 64], sizes = [2, 32], strides = [1, 1]} : vector<2x128xf32> to vector<2x32xf32>
    %357 = math.tanh %356 : vector<2x32xf32>
    %358 = vector.extract_strided_slice %343 {offsets = [0, 96], sizes = [2, 32], strides = [1, 1]} : vector<2x128xf32> to vector<2x32xf32>
    %359 = arith.negf %358 : vector<2x32xf32>
    %360 = math.exp %359 : vector<2x32xf32>
    %cst_74 = arith.constant 1.000000e+00 : f32
    %361 = vector.broadcast %cst_74 : f32 to vector<2x32xf32>
    %362 = arith.addf %361, %360 : vector<2x32xf32>
    %363 = arith.divf %361, %362 : vector<2x32xf32>
    %364 = arith.mulf %355, %299 : vector<2x32xf32>
    %365 = arith.mulf %349, %357 : vector<2x32xf32>
    %366 = arith.addf %364, %365 : vector<2x32xf32>
    %367 = math.tanh %366 : vector<2x32xf32>
    %368 = arith.mulf %363, %367 : vector<2x32xf32>
    %369 = vector.extract_strided_slice %342 {offsets = [0, 128], sizes = [2, 128], strides = [1, 1]} : vector<2x256xf32> to vector<2x128xf32>
    %370 = vector.extract_strided_slice %369 {offsets = [0, 0], sizes = [2, 32], strides = [1, 1]} : vector<2x128xf32> to vector<2x32xf32>
    %371 = arith.negf %370 : vector<2x32xf32>
    %372 = math.exp %371 : vector<2x32xf32>
    %cst_75 = arith.constant 1.000000e+00 : f32
    %373 = vector.broadcast %cst_75 : f32 to vector<2x32xf32>
    %374 = arith.addf %373, %372 : vector<2x32xf32>
    %375 = arith.divf %373, %374 : vector<2x32xf32>
    %376 = vector.extract_strided_slice %369 {offsets = [0, 32], sizes = [2, 32], strides = [1, 1]} : vector<2x128xf32> to vector<2x32xf32>
    %377 = arith.negf %376 : vector<2x32xf32>
    %378 = math.exp %377 : vector<2x32xf32>
    %cst_76 = arith.constant 1.000000e+00 : f32
    %379 = vector.broadcast %cst_76 : f32 to vector<2x32xf32>
    %380 = arith.addf %379, %378 : vector<2x32xf32>
    %381 = arith.divf %379, %380 : vector<2x32xf32>
    %382 = vector.extract_strided_slice %369 {offsets = [0, 64], sizes = [2, 32], strides = [1, 1]} : vector<2x128xf32> to vector<2x32xf32>
    %383 = math.tanh %382 : vector<2x32xf32>
    %384 = vector.extract_strided_slice %369 {offsets = [0, 96], sizes = [2, 32], strides = [1, 1]} : vector<2x128xf32> to vector<2x32xf32>
    %385 = arith.negf %384 : vector<2x32xf32>
    %386 = math.exp %385 : vector<2x32xf32>
    %cst_77 = arith.constant 1.000000e+00 : f32
    %387 = vector.broadcast %cst_77 : f32 to vector<2x32xf32>
    %388 = arith.addf %387, %386 : vector<2x32xf32>
    %389 = arith.divf %387, %388 : vector<2x32xf32>
    %390 = arith.mulf %381, %325 : vector<2x32xf32>
    %391 = arith.mulf %375, %383 : vector<2x32xf32>
    %392 = arith.addf %390, %391 : vector<2x32xf32>
    %393 = math.tanh %392 : vector<2x32xf32>
    %394 = arith.mulf %389, %393 : vector<2x32xf32>
    %395 = arith.index_cast %c5_i32 : i32 to index
    %c0_78 = arith.constant 0 : index
    %c0_79 = arith.constant 0 : index
    %396 = vector.load %arg3[%395, %c0_78, %c0_79] : memref<8x2x64xf32, #tpu.memory_space<vmem>>, vector<1x2x32xf32>
    %397 = vector.shape_cast %396 : vector<1x2x32xf32> to vector<2x32xf32>
    %398 = vector.shape_cast %368 : vector<2x32xf32> to vector<1x2x32xf32>
    tpu.vector_store %arg3[%395, %c0_78, %c0_79], %398 {strides = array<i32>} : memref<8x2x64xf32, #tpu.memory_space<vmem>>, vector<1x2x32xf32>,
    %c7_i32_80 = arith.constant 7 : i32
    %399 = arith.subi %c7_i32_80, %c5_i32 : i32
    %400 = arith.index_cast %399 : i32 to index
    %c0_81 = arith.constant 0 : index
    %c32_82 = arith.constant 32 : index
    %401 = vector.load %arg3[%400, %c0_81, %c32_82] : memref<8x2x64xf32, #tpu.memory_space<vmem>>, vector<1x2x32xf32>
    %402 = vector.shape_cast %401 : vector<1x2x32xf32> to vector<2x32xf32>
    %403 = vector.shape_cast %394 : vector<2x32xf32> to vector<1x2x32xf32>
    tpu.vector_store %arg3[%400, %c0_81, %c32_82], %403 {strides = array<i32>} : memref<8x2x64xf32, #tpu.memory_space<vmem>>, vector<1x2x32xf32>,
    %c6_i32 = arith.constant 6 : i32
    %404 = tpu.concatenate %368, %394 in 1 : vector<2x32xf32>, vector<2x32xf32> -> vector<2x64xf32>
    %405 = arith.index_cast %c6_i32 : i32 to index
    %c0_83 = arith.constant 0 : index
    %c0_84 = arith.constant 0 : index
    %406 = vector.load %arg1[%405, %c0_83, %c0_84] : memref<8x2x256xf32, #tpu.memory_space<vmem>>, vector<1x2x256xf32>
    %407 = vector.shape_cast %406 : vector<1x2x256xf32> to vector<2x256xf32>
    %cst_85 = arith.constant dense<0.000000e+00> : vector<2x256xf32>
    %408 = tpu.matmul %404, %0, %cst_85 {dimension_numbers = #tpu.dot_dimension_numbers<[1], [0], [0], [1], [0, 0, 1, 1], [], []>} : vector<2x64xf32>, vector<64x256xf32>, vector<2x256xf32> -> vector<2x256xf32>
    %409 = arith.addf %407, %408 : vector<2x256xf32>
    %410 = vector.extract_strided_slice %409 {offsets = [0, 0], sizes = [2, 128], strides = [1, 1]} : vector<2x256xf32> to vector<2x128xf32>
    %411 = vector.extract_strided_slice %410 {offsets = [0, 0], sizes = [2, 32], strides = [1, 1]} : vector<2x128xf32> to vector<2x32xf32>
    %412 = arith.negf %411 : vector<2x32xf32>
    %413 = math.exp %412 : vector<2x32xf32>
    %cst_86 = arith.constant 1.000000e+00 : f32
    %414 = vector.broadcast %cst_86 : f32 to vector<2x32xf32>
    %415 = arith.addf %414, %413 : vector<2x32xf32>
    %416 = arith.divf %414, %415 : vector<2x32xf32>
    %417 = vector.extract_strided_slice %410 {offsets = [0, 32], sizes = [2, 32], strides = [1, 1]} : vector<2x128xf32> to vector<2x32xf32>
    %418 = arith.negf %417 : vector<2x32xf32>
    %419 = math.exp %418 : vector<2x32xf32>
    %cst_87 = arith.constant 1.000000e+00 : f32
    %420 = vector.broadcast %cst_87 : f32 to vector<2x32xf32>
    %421 = arith.addf %420, %419 : vector<2x32xf32>
    %422 = arith.divf %420, %421 : vector<2x32xf32>
    %423 = vector.extract_strided_slice %410 {offsets = [0, 64], sizes = [2, 32], strides = [1, 1]} : vector<2x128xf32> to vector<2x32xf32>
    %424 = math.tanh %423 : vector<2x32xf32>
    %425 = vector.extract_strided_slice %410 {offsets = [0, 96], sizes = [2, 32], strides = [1, 1]} : vector<2x128xf32> to vector<2x32xf32>
    %426 = arith.negf %425 : vector<2x32xf32>
    %427 = math.exp %426 : vector<2x32xf32>
    %cst_88 = arith.constant 1.000000e+00 : f32
    %428 = vector.broadcast %cst_88 : f32 to vector<2x32xf32>
    %429 = arith.addf %428, %427 : vector<2x32xf32>
    %430 = arith.divf %428, %429 : vector<2x32xf32>
    %431 = arith.mulf %422, %366 : vector<2x32xf32>
    %432 = arith.mulf %416, %424 : vector<2x32xf32>
    %433 = arith.addf %431, %432 : vector<2x32xf32>
    %434 = math.tanh %433 : vector<2x32xf32>
    %435 = arith.mulf %430, %434 : vector<2x32xf32>
    %436 = vector.extract_strided_slice %409 {offsets = [0, 128], sizes = [2, 128], strides = [1, 1]} : vector<2x256xf32> to vector<2x128xf32>
    %437 = vector.extract_strided_slice %436 {offsets = [0, 0], sizes = [2, 32], strides = [1, 1]} : vector<2x128xf32> to vector<2x32xf32>
    %438 = arith.negf %437 : vector<2x32xf32>
    %439 = math.exp %438 : vector<2x32xf32>
    %cst_89 = arith.constant 1.000000e+00 : f32
    %440 = vector.broadcast %cst_89 : f32 to vector<2x32xf32>
    %441 = arith.addf %440, %439 : vector<2x32xf32>
    %442 = arith.divf %440, %441 : vector<2x32xf32>
    %443 = vector.extract_strided_slice %436 {offsets = [0, 32], sizes = [2, 32], strides = [1, 1]} : vector<2x128xf32> to vector<2x32xf32>
    %444 = arith.negf %443 : vector<2x32xf32>
    %445 = math.exp %444 : vector<2x32xf32>
    %cst_90 = arith.constant 1.000000e+00 : f32
    %446 = vector.broadcast %cst_90 : f32 to vector<2x32xf32>
    %447 = arith.addf %446, %445 : vector<2x32xf32>
    %448 = arith.divf %446, %447 : vector<2x32xf32>
    %449 = vector.extract_strided_slice %436 {offsets = [0, 64], sizes = [2, 32], strides = [1, 1]} : vector<2x128xf32> to vector<2x32xf32>
    %450 = math.tanh %449 : vector<2x32xf32>
    %451 = vector.extract_strided_slice %436 {offsets = [0, 96], sizes = [2, 32], strides = [1, 1]} : vector<2x128xf32> to vector<2x32xf32>
    %452 = arith.negf %451 : vector<2x32xf32>
    %453 = math.exp %452 : vector<2x32xf32>
    %cst_91 = arith.constant 1.000000e+00 : f32
    %454 = vector.broadcast %cst_91 : f32 to vector<2x32xf32>
    %455 = arith.addf %454, %453 : vector<2x32xf32>
    %456 = arith.divf %454, %455 : vector<2x32xf32>
    %457 = arith.mulf %448, %392 : vector<2x32xf32>
    %458 = arith.mulf %442, %450 : vector<2x32xf32>
    %459 = arith.addf %457, %458 : vector<2x32xf32>
    %460 = math.tanh %459 : vector<2x32xf32>
    %461 = arith.mulf %456, %460 : vector<2x32xf32>
    %462 = arith.index_cast %c6_i32 : i32 to index
    %c0_92 = arith.constant 0 : index
    %c0_93 = arith.constant 0 : index
    %463 = vector.load %arg3[%462, %c0_92, %c0_93] : memref<8x2x64xf32, #tpu.memory_space<vmem>>, vector<1x2x32xf32>
    %464 = vector.shape_cast %463 : vector<1x2x32xf32> to vector<2x32xf32>
    %465 = vector.shape_cast %435 : vector<2x32xf32> to vector<1x2x32xf32>
    tpu.vector_store %arg3[%462, %c0_92, %c0_93], %465 {strides = array<i32>} : memref<8x2x64xf32, #tpu.memory_space<vmem>>, vector<1x2x32xf32>,
    %c7_i32_94 = arith.constant 7 : i32
    %466 = arith.subi %c7_i32_94, %c6_i32 : i32
    %467 = arith.index_cast %466 : i32 to index
    %c0_95 = arith.constant 0 : index
    %c32_96 = arith.constant 32 : index
    %468 = vector.load %arg3[%467, %c0_95, %c32_96] : memref<8x2x64xf32, #tpu.memory_space<vmem>>, vector<1x2x32xf32>
    %469 = vector.shape_cast %468 : vector<1x2x32xf32> to vector<2x32xf32>
    %470 = vector.shape_cast %461 : vector<2x32xf32> to vector<1x2x32xf32>
    tpu.vector_store %arg3[%467, %c0_95, %c32_96], %470 {strides = array<i32>} : memref<8x2x64xf32, #tpu.memory_space<vmem>>, vector<1x2x32xf32>,
    %c7_i32_97 = arith.constant 7 : i32
    %471 = tpu.concatenate %435, %461 in 1 : vector<2x32xf32>, vector<2x32xf32> -> vector<2x64xf32>
    %472 = arith.index_cast %c7_i32_97 : i32 to index
    %c0_98 = arith.constant 0 : index
    %c0_99 = arith.constant 0 : index
    %473 = vector.load %arg1[%472, %c0_98, %c0_99] : memref<8x2x256xf32, #tpu.memory_space<vmem>>, vector<1x2x256xf32>
    %474 = vector.shape_cast %473 : vector<1x2x256xf32> to vector<2x256xf32>
    %cst_100 = arith.constant dense<0.000000e+00> : vector<2x256xf32>
    %475 = tpu.matmul %471, %0, %cst_100 {dimension_numbers = #tpu.dot_dimension_numbers<[1], [0], [0], [1], [0, 0, 1, 1], [], []>} : vector<2x64xf32>, vector<64x256xf32>, vector<2x256xf32> -> vector<2x256xf32>
    %476 = arith.addf %474, %475 : vector<2x256xf32>
    %477 = vector.extract_strided_slice %476 {offsets = [0, 0], sizes = [2, 128], strides = [1, 1]} : vector<2x256xf32> to vector<2x128xf32>
    %478 = vector.extract_strided_slice %477 {offsets = [0, 0], sizes = [2, 32], strides = [1, 1]} : vector<2x128xf32> to vector<2x32xf32>
    %479 = arith.negf %478 : vector<2x32xf32>
    %480 = math.exp %479 : vector<2x32xf32>
    %cst_101 = arith.constant 1.000000e+00 : f32
    %481 = vector.broadcast %cst_101 : f32 to vector<2x32xf32>
    %482 = arith.addf %481, %480 : vector<2x32xf32>
    %483 = arith.divf %481, %482 : vector<2x32xf32>
    %484 = vector.extract_strided_slice %477 {offsets = [0, 32], sizes = [2, 32], strides = [1, 1]} : vector<2x128xf32> to vector<2x32xf32>
    %485 = arith.negf %484 : vector<2x32xf32>
    %486 = math.exp %485 : vector<2x32xf32>
    %cst_102 = arith.constant 1.000000e+00 : f32
    %487 = vector.broadcast %cst_102 : f32 to vector<2x32xf32>
    %488 = arith.addf %487, %486 : vector<2x32xf32>
    %489 = arith.divf %487, %488 : vector<2x32xf32>
    %490 = vector.extract_strided_slice %477 {offsets = [0, 64], sizes = [2, 32], strides = [1, 1]} : vector<2x128xf32> to vector<2x32xf32>
    %491 = math.tanh %490 : vector<2x32xf32>
    %492 = vector.extract_strided_slice %477 {offsets = [0, 96], sizes = [2, 32], strides = [1, 1]} : vector<2x128xf32> to vector<2x32xf32>
    %493 = arith.negf %492 : vector<2x32xf32>
    %494 = math.exp %493 : vector<2x32xf32>
    %cst_103 = arith.constant 1.000000e+00 : f32
    %495 = vector.broadcast %cst_103 : f32 to vector<2x32xf32>
    %496 = arith.addf %495, %494 : vector<2x32xf32>
    %497 = arith.divf %495, %496 : vector<2x32xf32>
    %498 = arith.mulf %489, %433 : vector<2x32xf32>
    %499 = arith.mulf %483, %491 : vector<2x32xf32>
    %500 = arith.addf %498, %499 : vector<2x32xf32>
    %501 = math.tanh %500 : vector<2x32xf32>
    %502 = arith.mulf %497, %501 : vector<2x32xf32>
    %503 = vector.extract_strided_slice %476 {offsets = [0, 128], sizes = [2, 128], strides = [1, 1]} : vector<2x256xf32> to vector<2x128xf32>
    %504 = vector.extract_strided_slice %503 {offsets = [0, 0], sizes = [2, 32], strides = [1, 1]} : vector<2x128xf32> to vector<2x32xf32>
    %505 = arith.negf %504 : vector<2x32xf32>
    %506 = math.exp %505 : vector<2x32xf32>
    %cst_104 = arith.constant 1.000000e+00 : f32
    %507 = vector.broadcast %cst_104 : f32 to vector<2x32xf32>
    %508 = arith.addf %507, %506 : vector<2x32xf32>
    %509 = arith.divf %507, %508 : vector<2x32xf32>
    %510 = vector.extract_strided_slice %503 {offsets = [0, 32], sizes = [2, 32], strides = [1, 1]} : vector<2x128xf32> to vector<2x32xf32>
    %511 = arith.negf %510 : vector<2x32xf32>
    %512 = math.exp %511 : vector<2x32xf32>
    %cst_105 = arith.constant 1.000000e+00 : f32
    %513 = vector.broadcast %cst_105 : f32 to vector<2x32xf32>
    %514 = arith.addf %513, %512 : vector<2x32xf32>
    %515 = arith.divf %513, %514 : vector<2x32xf32>
    %516 = vector.extract_strided_slice %503 {offsets = [0, 64], sizes = [2, 32], strides = [1, 1]} : vector<2x128xf32> to vector<2x32xf32>
    %517 = math.tanh %516 : vector<2x32xf32>
    %518 = vector.extract_strided_slice %503 {offsets = [0, 96], sizes = [2, 32], strides = [1, 1]} : vector<2x128xf32> to vector<2x32xf32>
    %519 = arith.negf %518 : vector<2x32xf32>
    %520 = math.exp %519 : vector<2x32xf32>
    %cst_106 = arith.constant 1.000000e+00 : f32
    %521 = vector.broadcast %cst_106 : f32 to vector<2x32xf32>
    %522 = arith.addf %521, %520 : vector<2x32xf32>
    %523 = arith.divf %521, %522 : vector<2x32xf32>
    %524 = arith.mulf %515, %459 : vector<2x32xf32>
    %525 = arith.mulf %509, %517 : vector<2x32xf32>
    %526 = arith.addf %524, %525 : vector<2x32xf32>
    %527 = math.tanh %526 : vector<2x32xf32>
    %528 = arith.mulf %523, %527 : vector<2x32xf32>
    %529 = arith.index_cast %c7_i32_97 : i32 to index
    %c0_107 = arith.constant 0 : index
    %c0_108 = arith.constant 0 : index
    %530 = vector.load %arg3[%529, %c0_107, %c0_108] : memref<8x2x64xf32, #tpu.memory_space<vmem>>, vector<1x2x32xf32>
    %531 = vector.shape_cast %530 : vector<1x2x32xf32> to vector<2x32xf32>
    %532 = vector.shape_cast %502 : vector<2x32xf32> to vector<1x2x32xf32>
    tpu.vector_store %arg3[%529, %c0_107, %c0_108], %532 {strides = array<i32>} : memref<8x2x64xf32, #tpu.memory_space<vmem>>, vector<1x2x32xf32>,
    %c7_i32_109 = arith.constant 7 : i32
    %533 = arith.subi %c7_i32_109, %c7_i32_97 : i32
    %534 = arith.index_cast %533 : i32 to index
    %c0_110 = arith.constant 0 : index
    %c32_111 = arith.constant 32 : index
    %535 = vector.load %arg3[%534, %c0_110, %c32_111] : memref<8x2x64xf32, #tpu.memory_space<vmem>>, vector<1x2x32xf32>
    %536 = vector.shape_cast %535 : vector<1x2x32xf32> to vector<2x32xf32>
    %537 = vector.shape_cast %528 : vector<2x32xf32> to vector<1x2x32xf32>
    tpu.vector_store %arg3[%534, %c0_110, %c32_111], %537 {strides = array<i32>} : memref<8x2x64xf32, #tpu.memory_space<vmem>>, vector<1x2x32xf32>,
    %c8_i32 = arith.constant 8 : i32
    %c0_112 = arith.constant 0 : index
    %c0_113 = arith.constant 0 : index
    %c0_114 = arith.constant 0 : index
    %538 = vector.load %arg4[%c0_112, %c0_113, %c0_114] : memref<2x2x32xf32, #tpu.memory_space<vmem>>, vector<1x2x32xf32>
    %539 = vector.shape_cast %538 : vector<1x2x32xf32> to vector<2x32xf32>
    %540 = vector.shape_cast %502 : vector<2x32xf32> to vector<1x2x32xf32>
    tpu.vector_store %arg4[%c0_112, %c0_113, %c0_114], %540 {strides = array<i32>} : memref<2x2x32xf32, #tpu.memory_space<vmem>>, vector<1x2x32xf32>,
    %c1 = arith.constant 1 : index
    %c0_115 = arith.constant 0 : index
    %c0_116 = arith.constant 0 : index
    %541 = vector.load %arg4[%c1, %c0_115, %c0_116] : memref<2x2x32xf32, #tpu.memory_space<vmem>>, vector<1x2x32xf32>
    %542 = vector.shape_cast %541 : vector<1x2x32xf32> to vector<2x32xf32>
    %543 = vector.shape_cast %528 : vector<2x32xf32> to vector<1x2x32xf32>
    tpu.vector_store %arg4[%c1, %c0_115, %c0_116], %543 {strides = array<i32>} : memref<2x2x32xf32, #tpu.memory_space<vmem>>, vector<1x2x32xf32>,
    %c0_117 = arith.constant 0 : index
    %c0_118 = arith.constant 0 : index
    %c0_119 = arith.constant 0 : index
    %544 = vector.load %arg5[%c0_117, %c0_118, %c0_119] : memref<2x2x32xf32, #tpu.memory_space<vmem>>, vector<1x2x32xf32>
    %545 = vector.shape_cast %544 : vector<1x2x32xf32> to vector<2x32xf32>
    %546 = vector.shape_cast %500 : vector<2x32xf32> to vector<1x2x32xf32>
    tpu.vector_store %arg5[%c0_117, %c0_118, %c0_119], %546 {strides = array<i32>} : memref<2x2x32xf32, #tpu.memory_space<vmem>>, vector<1x2x32xf32>,
    %c1_120 = arith.constant 1 : index
    %c0_121 = arith.constant 0 : index
    %c0_122 = arith.constant 0 : index
    %547 = vector.load %arg5[%c1_120, %c0_121, %c0_122] : memref<2x2x32xf32, #tpu.memory_space<vmem>>, vector<1x2x32xf32>
    %548 = vector.shape_cast %547 : vector<1x2x32xf32> to vector<2x32xf32>
    %549 = vector.shape_cast %526 : vector<2x32xf32> to vector<1x2x32xf32>
    tpu.vector_store %arg5[%c1_120, %c0_121, %c0_122], %549 {strides = array<i32>} : memref<2x2x32xf32, #tpu.memory_space<vmem>>, vector<1x2x32xf32>,
    return
  }
  func.func @transform_0(%arg0: i32) -> (i32, i32, i32) {
    %c0_i32 = arith.constant 0 : i32
    %c0_i32_0 = arith.constant 0 : i32
    %c0_i32_1 = arith.constant 0 : i32
    return %c0_i32, %arg0, %c0_i32_0 : i32, i32, i32
  }
  func.func @transform_1(%arg0: i32) -> (i32, i32) {
    %c0_i32 = arith.constant 0 : i32
    %c0_i32_0 = arith.constant 0 : i32
    %c0_i32_1 = arith.constant 0 : i32
    return %c0_i32, %c0_i32_0 : i32, i32
  }
  func.func @transform_2(%arg0: i32) -> (i32, i32, i32) {
    %c0_i32 = arith.constant 0 : i32
    %c0_i32_0 = arith.constant 0 : i32
    %c0_i32_1 = arith.constant 0 : i32
    return %c0_i32, %arg0, %c0_i32_0 : i32, i32, i32
  }
  func.func @transform_3(%arg0: i32) -> (i32, i32, i32) {
    %c0_i32 = arith.constant 0 : i32
    %c0_i32_0 = arith.constant 0 : i32
    %c0_i32_1 = arith.constant 0 : i32
    return %c0_i32, %arg0, %c0_i32_0 : i32, i32, i32
  }
  func.func @transform_4(%arg0: i32) -> (i32, i32, i32) {
    %c0_i32 = arith.constant 0 : i32
    %c0_i32_0 = arith.constant 0 : i32
    %c0_i32_1 = arith.constant 0 : i32
    return %c0_i32, %arg0, %c0_i32_0 : i32, i32, i32
  }
}

</mosaic_0001>

<bundles_post_ra>
// kernel: bilstm_encoder.1
= control target key start
LH: loop header
LB: loop body
LE: loop exit
PB: predicated region body
PF: predicated region fallthrough
CT: control target
= control target key end

     0   :  { %10 = vsyncpa [#allocation3], 0  ;;  %s2558_s0 = inlined_call_operand.vmem [shape: f32[8,2,256], index: 0, kind: input, shape index: {}]   ;;  %s2559_s1 = inlined_call_operand.vmem [shape: f32[64,256], index: 1, kind: input, shape index: {}]   ;;  %s2560_s2 = inlined_call_operand.vmem [shape: f32[8,2,64], index: 2, kind: output, shape index: {0}]   ;;  %s2561_s3 = inlined_call_operand.hbm [shape: f32[2,2,32], index: 3, kind: output, shape index: {1}]   ;;  %s2562_s4 = inlined_call_operand.hbm [shape: f32[2,2,32], index: 4, kind: output, shape index: {2}]  }
   0x1   :  { %v1980_v0 = vld [vmem:[%s2559_s1 + $0x78] sm:$0xff]  ;;  %v1985_v1 = vld [vmem:[%s2559_s1 + $0x70] sm:$0xff]  ;;  %v1990_v2 = vld [vmem:[%s2559_s1 + $0x68] sm:$0xff] }
   0x2   :  { %65 = vmatpush.msra.mxu1 %v1980_v0  ;;  %45 = vmatpush.msra.mxu0 %v1985_v1  ;;  %v1997_v3 = vld [vmem:[%s2559_s1 + $0x60] sm:$0xff]  ;;  %v2002_v4 = vld [vmem:[%s2559_s1 + $0x58] sm:$0xff]  ;;  %v2007_v5 = vld [vmem:[%s2559_s1 + $0x50] sm:$0xff] }
   0x3   :  { %241 = vmatpush.msra.mxu2 %v1985_v1  ;;  %261 = vmatpush.msra.mxu3 %v1980_v0  ;;  %v2016_v6 = vld [vmem:[%s2559_s1 + $0x48] sm:$0xff]  ;;  %v2021_v7 = vld [vmem:[%s2559_s1 + $0x40] sm:$0xff] }
   0x4   :  { %66 = vmatpush.msra.mxu1 %v1990_v2  ;;  %46 = vmatpush.msra.mxu0 %v1997_v3 }
   0x5   :  { %242 = vmatpush.msra.mxu2 %v1997_v3  ;;  %262 = vmatpush.msra.mxu3 %v1990_v2 }
   0x6   :  { %67 = vmatpush.msra.mxu1 %v2002_v4  ;;  %47 = vmatpush.msra.mxu0 %v2007_v5 }
   0x7   :  { %11 = vsyncpa [#allocation5], 0  ;;  %v2030_v8 = vld [vmem:[%s2559_s1 + $0x38] sm:$0xff]  ;;  %v2035_v9 = vld [vmem:[%s2559_s1 + $0x30] sm:$0xff]  ;;  %243 = vmatpush.msra.mxu2 %v2007_v5  ;;  %263 = vmatpush.msra.mxu3 %v2002_v4  ;;  %v1945_v16 = vmov 0.0   ;;  %vm80_vm0 = vcmask 1041408  }
   0x8   :  { %68 = vmatpush.msra.mxu1 %v2016_v6  ;;  %48 = vmatpush.msra.mxu0 %v2021_v7  ;;  %v2044_v10 = vld [vmem:[%s2559_s1 + $0x28] sm:$0xff]  ;;  %v2049_v11 = vld [vmem:[%s2559_s1 + $0x20] sm:$0xff]  ;;  %v2058_v12 = vld [vmem:[%s2559_s1 + $0x18] sm:$0xff]  ;;  %s1946_s23 = smov 64   ;;  %s1947_s24 = smov 96  }
   0x9   :  { %244 = vmatpush.msra.mxu2 %v2021_v7  ;;  %264 = vmatpush.msra.mxu3 %v2016_v6  ;;  %v2063_v13 = vld [vmem:[%s2559_s1 + $0x10] sm:$0xff]  ;;  %v2072_v14 = vld [vmem:[%s2559_s1 + $0x8] sm:$0xff]  ;;  %v2077_v15 = vld [vmem:[%s2559_s1] sm:$0xff]  ;;  %s1948_s25 = smov 32   ;;  %s1598_s13 = sshll.u32 %s2562_s4, 4  ;;  %s1599_s13 = int_to_ptr.hbm [resolvable:$true] %s1598_s13 }
   0xa   :  { %69 = vmatpush.msra.mxu1 %v2030_v8  ;;  %49 = vmatpush.msra.mxu0 %v2035_v9  ;;  %v32_v20 = vld [vmem:[%s2558_s0] sm:$0xf]  ;;  %s1951_s4 = smov [#allocation2]   ;;  %s1585_s20 = sshll.u32 %s2561_s3, 4  ;;  %s1586_s20 = int_to_ptr.hbm [resolvable:$true] %s1585_s20 }
   0xb   :  { %245 = vmatpush.msra.mxu2 %v2035_v9  ;;  %265 = vmatpush.msra.mxu3 %v2030_v8  ;;  %s1583_s17 = sshll.u32 %s1951_s4, 4  ;;  %s1584_s17 = int_to_ptr.vmem [resolvable:$true] %s1583_s17 }
   0xc   :  { %70 = vmatpush.msra.mxu1 %v2044_v10  ;;  %50 = vmatpush.msra.mxu0 %v2049_v11 }
   0xd   :  { %246 = vmatpush.msra.mxu2 %v2049_v11  ;;  %266 = vmatpush.msra.mxu3 %v2044_v10 }
   0xe   :  { %71 = vmatpush.msra.mxu1 %v2058_v12  ;;  %51 = vmatpush.msra.mxu0 %v2063_v13 }
   0xf   :  { %247 = vmatpush.msra.mxu2 %v2063_v13  ;;  %267 = vmatpush.msra.mxu3 %v2058_v12 }
  0x10   :  { %72 = vmatpush.msra.mxu1 %v2072_v14  ;;  %52 = vmatpush.msra.mxu0 %v2077_v15 }
  0x11   :  { %73 = vmatmul.f32.vlgmr.msra.gmra.mxu1 %v1945_v16  ;;  %53 = vmatmul.f32.vlgmr.msra.gmra.mxu0 %v1945_v16 }
  0x12   :  { %248 = vmatpush.msra.mxu2 %v2077_v15  ;;  %268 = vmatpush.msra.mxu3 %v2072_v14 }
  0x13   :  { %434 = vmatpush.msrb.mxu0 %v1985_v1  ;;  %454 = vmatpush.msrb.mxu1 %v1980_v0 }
  0x14   :  { %627 = vmatpush.msrb.mxu2 %v1985_v1  ;;  %647 = vmatpush.msrb.mxu3 %v1980_v0 }
  0x15   :  { %435 = vmatpush.msrb.mxu0 %v1997_v3  ;;  %455 = vmatpush.msrb.mxu1 %v1990_v2 }
  0x16   :  { %628 = vmatpush.msrb.mxu2 %v1997_v3  ;;  %648 = vmatpush.msrb.mxu3 %v1990_v2 }
  0x17   :  { %436 = vmatpush.msrb.mxu0 %v2007_v5  ;;  %456 = vmatpush.msrb.mxu1 %v2002_v4 }
  0x18   :  { %629 = vmatpush.msrb.mxu2 %v2007_v5  ;;  %649 = vmatpush.msrb.mxu3 %v2002_v4 }
  0x19   :  { %437 = vmatpush.msrb.mxu0 %v2021_v7  ;;  %457 = vmatpush.msrb.mxu1 %v2016_v6 }
  0x1a   :  { %630 = vmatpush.msrb.mxu2 %v2021_v7  ;;  %650 = vmatpush.msrb.mxu3 %v2016_v6 }
  0x1b   :  { %438 = vmatpush.msrb.mxu0 %v2035_v9  ;;  %458 = vmatpush.msrb.mxu1 %v2030_v8 }
  0x1c   :  { %631 = vmatpush.msrb.mxu2 %v2035_v9  ;;  %651 = vmatpush.msrb.mxu3 %v2030_v8 }
  0x1d   :  { %439 = vmatpush.msrb.mxu0 %v2049_v11  ;;  %459 = vmatpush.msrb.mxu1 %v2044_v10 }
  0x1e   :  { %632 = vmatpush.msrb.mxu2 %v2049_v11  ;;  %652 = vmatpush.msrb.mxu3 %v2044_v10 }
  0x1f   :  { %440 = vmatpush.msrb.mxu0 %v2063_v13  ;;  %460 = vmatpush.msrb.mxu1 %v2058_v12 }
  0x20   :  { %633 = vmatpush.msrb.mxu2 %v2063_v13  ;;  %653 = vmatpush.msrb.mxu3 %v2058_v12 }
  0x21   :  { %441 = vmatpush.msrb.mxu0 %v2077_v15  ;;  %461 = vmatpush.msrb.mxu1 %v2072_v14 }
  0x22   :  { %634 = vmatpush.msrb.mxu2 %v2077_v15  ;;  %654 = vmatpush.msrb.mxu3 %v2072_v14 }
  0x23   :  { %820 = vmatpush.msra.mxu0 %v1985_v1  ;;  %840 = vmatpush.msra.mxu1 %v1980_v0 }
  0x25   :  { %821 = vmatpush.msra.mxu0 %v1997_v3  ;;  %841 = vmatpush.msra.mxu1 %v1990_v2 }
  0x27   :  { %822 = vmatpush.msra.mxu0 %v2007_v5  ;;  %842 = vmatpush.msra.mxu1 %v2002_v4 }
  0x29   :  { %823 = vmatpush.msra.mxu0 %v2021_v7  ;;  %843 = vmatpush.msra.mxu1 %v2016_v6 }
  0x2b   :  { %824 = vmatpush.msra.mxu0 %v2035_v9  ;;  %844 = vmatpush.msra.mxu1 %v2030_v8 }
  0x2d   :  { %825 = vmatpush.msra.mxu0 %v2049_v11  ;;  %845 = vmatpush.msra.mxu1 %v2044_v10 }
  0x2f   :  { %826 = vmatpush.msra.mxu0 %v2063_v13  ;;  %846 = vmatpush.msra.mxu1 %v2058_v12 }
  0x31   :  { %827 = vmatpush.msra.mxu0 %v2077_v15  ;;  %847 = vmatpush.msra.mxu1 %v2072_v14 }
  0x8e   :  { %v74_v17 = vpop.f32.mrf.mxu1  ;;  %v54_v18 = vpop.f32.mrf.mxu0 }
  0x8f   :  { %v79_v19 = vrot.slane %v74_v17, 6 }
  0x91   :  { %v81_v21 = vsel %vm80_vm0, %v54_v18, %v79_v19 }
  0x92   :  { %v83_v22 = vadd.f32 %v81_v21, %v32_v20 }
  0x94   :  { %166 = vrot.lane.b32.xlu2 %v83_v22, %s1946_s23  ;;  %143 = vrot.lane.b32.xlu1 %v83_v22, %s1947_s24  ;;  %1691 = vtanh.f32 %v83_v22  ;;  %v1617_v24 = vmul.f32 -1.442695, %v83_v22  ;;  %v122_v45 = vrot.slane %v83_v22, 2 }
  0x96   :  { %1693 = vpow2.f32 %v1617_v24  ;;  %v1618_v47 = vmul.f32 -1.442695, %v122_v45 }
  0x9a   :  { %v1692_v23 = vpop.eup %1691 }
  0x9b   :  { %106 = vrot.lane.b32.xlu0 %v1692_v23, %s1946_s23 }
  0x9c   :  { %171 = vrot.lane.b32.xlu1 %v83_v22, %s1948_s25  ;;  %v1694_v25 = vpop.eup %1693 }
  0x9d   :  { %v87_v26 = vadd.f32 1.0, %v1694_v25 }
  0x9f   :  { %1695 = vrcp.f32 %v87_v26  ;;  %v99_v32 = vand.u32 2147483648, %v87_v26  ;;  %vm93_vm2 = vweird.f32 %v87_v26  ;;  %v97_v33 = vand.u32 2147483647, %v87_v26 }
  0xa1   :  { %v100_v35 = vor.u32 1.1754944e-38, %v99_v32  ;;  %vm98_vm4 = vcmp.eq.f32.partialorder %v97_v33, 8.507059e+37 }
  0xa5   :  { %v1696_v27 = vpop.eup %1695 }
  0xa6   :  { %v89_v28 = vmul.f32 %v1696_v27, %v87_v26  ;;  %vm94_vm1 = vweird.f32 %v1696_v27 }
  0xa7   :  { %vm95_vm3 = vmor %vm93_vm2, %vm94_vm1  ;;  %vm226_vm2 = vcmask 261120  }
  0xa8   :  { %v90_v29 = vsub.f32 1.0, %v89_v28 }
  0xaa   :  { %v91_v30 = vmul.f32 %v1696_v27, %v90_v29 }
  0xac   :  { %v92_v31 = vadd.f32 %v1696_v27, %v91_v30 }
  0xae   :  { %v96_v34 = vsel %vm95_vm3, %v1696_v27, %v92_v31  ;;  %vm33_vm3 = vcmask 523264  }
  0xaf   :  { %v2145_v37 = vsel %vm98_vm4, %v100_v35, %v96_v34 }
  0xb0   :  { %v104_v39 = vmul.f32 0.0, %v2145_v37 }
  0xee   :  { %v167_v62 = vpop.permute.xlu2 %166 }
  0xef   :  { %v168_v17 = vrot.slane %v167_v62, 2 }
 0x106   :  { %v144_v43 = vpop.permute.xlu1 %143 }
 0x107   :  { %v145_v44 = vrot.slane %v144_v43, 2 }
 0x109   :  { %v1619_v46 = vmul.f32 -1.442695, %v145_v44 }
 0x10d   :  { %v107_v36 = vpop.permute.xlu0 %106 }
 0x10e   :  { %v109_v38 = vmul.f32 %v107_v36, %v2145_v37  ;;  %v172_v49 = vpop.permute.xlu1 %171 }
 0x10f   :  { %v173_v52 = vrot.slane %v172_v49, 2 }
 0x110   :  { %111 = vrot.lane.b32.xlu0 %v109_v38, %s1948_s25 }
 0x111   :  { %v1620_v54 = vmul.f32 -1.442695, %v173_v52 }
 0x182   :  { %v112_v40 = vpop.permute.xlu0 %111 }
 0x183   :  { %v2150_v41 = vadd.f32 %v112_v40, %v104_v39 }
 0x185   :  { %1697 = vtanh.f32 %v2150_v41 }
 0x186   :  { %1699 = vpow2.f32 %v1619_v46 }
 0x187   :  { %1701 = vpow2.f32 %v1618_v47 }
 0x18b   :  { %v1698_v42 = vpop.eup %1697 }
 0x18c   :  { %117 = vrot.lane.b32.xlu2 %v1698_v42, %s1946_s23  ;;  %v1700_v48 = vpop.eup %1699 }
 0x18d   :  { %v150_v50 = vadd.f32 1.0, %v1700_v48  ;;  %v1702_v51 = vpop.eup %1701 }
 0x18e   :  { %v127_v53 = vadd.f32 1.0, %v1702_v51 }
 0x18f   :  { %1703 = vrcp.f32 %v150_v50  ;;  %v162_v20 = vand.u32 2147483648, %v150_v50  ;;  %vm156_vm6 = vweird.f32 %v150_v50  ;;  %v160_v21 = vand.u32 2147483647, %v150_v50 }
 0x190   :  { %1705 = vrcp.f32 %v127_v53  ;;  %v139_v25 = vand.u32 2147483648, %v127_v53  ;;  %vm133_vm9 = vweird.f32 %v127_v53  ;;  %v137_v27 = vand.u32 2147483647, %v127_v53 }
 0x191   :  { %1707 = vpow2.f32 %v1620_v54  ;;  %v163_v26 = vor.u32 1.1754944e-38, %v162_v20  ;;  %vm161_vm10 = vcmp.eq.f32.partialorder %v160_v21, 8.507059e+37 }
 0x192   :  { %v140_v32 = vor.u32 1.1754944e-38, %v139_v25  ;;  %vm138_vm12 = vcmp.eq.f32.partialorder %v137_v27, 8.507059e+37 }
 0x195   :  { %v1704_v55 = vpop.eup %1703 }
 0x196   :  { %v152_v56 = vmul.f32 %v1704_v55, %v150_v50  ;;  %v1706_v57 = vpop.eup %1705  ;;  %vm157_vm5 = vweird.f32 %v1704_v55 }
 0x197   :  { %v1708_v58 = vpop.eup %1707  ;;  %v129_v59 = vmul.f32 %v1706_v57, %v127_v53  ;;  %vm158_vm7 = vmor %vm156_vm6, %vm157_vm5  ;;  %vm134_vm8 = vweird.f32 %v1706_v57 }
 0x198   :  { %v153_v60 = vsub.f32 1.0, %v152_v56  ;;  %v178_v61 = vadd.f32 1.0, %v1708_v58  ;;  %vm135_vm11 = vmor %vm133_vm9, %vm134_vm8  ;;  %v1622_v58 = vld [vmem:[%s2558_s0 + $0x4] sm:$0xf] }
 0x199   :  { %v130_v63 = vsub.f32 1.0, %v129_v59 }
 0x19a   :  { %v154_v16 = vmul.f32 %v1704_v55, %v153_v60  ;;  %1709 = vrcp.f32 %v178_v61  ;;  %v190_v44 = vand.u32 2147483648, %v178_v61  ;;  %vm184_vm14 = vweird.f32 %v178_v61 }
 0x19b   :  { %v131_v18 = vmul.f32 %v1706_v57, %v130_v63  ;;  %1711 = vtanh.f32 %v168_v17  ;;  %v188_v45 = vand.u32 2147483647, %v178_v61 }
 0x19c   :  { %v155_v19 = vadd.f32 %v1704_v55, %v154_v16  ;;  %v191_v48 = vor.u32 1.1754944e-38, %v190_v44 }
 0x19d   :  { %v132_v23 = vadd.f32 %v1706_v57, %v131_v18  ;;  %vm189_vm1 = vcmp.eq.f32.partialorder %v188_v45, 8.507059e+37 }
 0x19e   :  { %v159_v24 = vsel %vm158_vm7, %v1704_v55, %v155_v19 }
 0x19f   :  { %v164_v28 = vsel %vm161_vm10, %v163_v26, %v159_v24  ;;  %v136_v30 = vsel %vm135_vm11, %v1706_v57, %v132_v23 }
 0x1a0   :  { %v1710_v22 = vpop.eup %1709  ;;  %v194_v33 = vmul.f32 0.0, %v164_v28  ;;  %v141_v34 = vsel %vm138_vm12, %v140_v32, %v136_v30 }
 0x1a1   :  { %v180_v29 = vmul.f32 %v1710_v22, %v178_v61  ;;  %v1712_v31 = vpop.eup %1711  ;;  %vm185_vm13 = vweird.f32 %v1710_v22 }
 0x1a2   :  { %v195_v36 = vmul.f32 %v1712_v31, %v141_v34  ;;  %vm186_vm15 = vmor %vm184_vm14, %vm185_vm13 }
 0x1a3   :  { %v181_v35 = vsub.f32 1.0, %v180_v29 }
 0x1a4   :  { %v2154_v38 = vadd.f32 %v195_v36, %v194_v33 }
 0x1a5   :  { %v182_v39 = vmul.f32 %v1710_v22, %v181_v35 }
 0x1a6   :  { %1713 = vtanh.f32 %v2154_v38 }
 0x1a7   :  { %v183_v42 = vadd.f32 %v1710_v22, %v182_v39 }
 0x1a9   :  { %v187_v46 = vsel %vm186_vm15, %v1710_v22, %v183_v42 }
 0x1aa   :  { %v192_v49 = vsel %vm189_vm1, %v191_v48, %v187_v46 }
 0x1ac   :  { %v1714_v47 = vpop.eup %1713 }
 0x1ad   :  { %v198_v50 = vmul.f32 %v1714_v47, %v192_v49 }
 0x1e6   :  { %v118_v40 = vpop.permute.xlu2 %117 }
 0x1e7   :  { %v120_v43 = vmul.f32 %v118_v40, %v2145_v37 }
 0x1e9   :  { %200 = vst [vmem:[#allocation1] ss:$4 sm:$0xff] %v120_v43 }
 0x1f0   :  { %v2158_v51 = vld.sshfl [vmem:[#allocation1] sm:$0xff pattern:$0x73625140] }
 0x1f1   :  { %208 = vst [vmem:[#allocation1] ss:$4 sm:$0xff] %v198_v50 }
 0x1f8   :  { %v2160_v52 = vld.sshfl [vmem:[#allocation1] sm:$0xff pattern:$0x73625140] }
 0x1f9   :  { %216 = vst [vmem:[#allocation1] ss:$4 sm:$0xff] %v120_v43 }
 0x200   :  { %v217_v53 = vld.sshfl [vmem:[#allocation1] sm:$0xff pattern:$0x73625140] }
 0x201   :  { %221 = vst [vmem:[#allocation1] ss:$4 sm:$0xff] %v198_v50  ;;  %218 = vrot.lane.b32.xlu0 %v217_v53, %s1948_s25 }
 0x208   :  { %v222_v37 = vld.sshfl [vmem:[#allocation1] sm:$0xff pattern:$0x73625140] }
 0x209   :  { %223 = vrot.lane.b32.xlu1 %v222_v37, %s1948_s25 }
 0x273   :  { %v219_v54 = vpop.permute.xlu0 %218 }
 0x27b   :  { %v224_v55 = vpop.permute.xlu1 %223 }
 0x27c   :  { %v227_v56 = vsel %vm226_vm2, %v219_v54, %v224_v55 }
 0x27d   :  { %1623 = vmatmul.msk.f32.vlgmr.msra.gmra.mxu2 %vm33_vm3, %v227_v56  ;;  %1624 = vmatmul.msk.f32.vlgmr.msra.gmra.mxu3 %vm33_vm3, %v227_v56 }
 0x27e   :  { %1011 = vmatpush.msra.mxu2 %v1985_v1  ;;  %1031 = vmatpush.msra.mxu3 %v1980_v0 }
 0x280   :  { %1012 = vmatpush.msra.mxu2 %v1997_v3  ;;  %1032 = vmatpush.msra.mxu3 %v1990_v2 }
 0x282   :  { %1013 = vmatpush.msra.mxu2 %v2007_v5  ;;  %1033 = vmatpush.msra.mxu3 %v2002_v4 }
 0x284   :  { %1014 = vmatpush.msra.mxu2 %v2021_v7  ;;  %1034 = vmatpush.msra.mxu3 %v2016_v6 }
 0x286   :  { %1015 = vmatpush.msra.mxu2 %v2035_v9  ;;  %1035 = vmatpush.msra.mxu3 %v2030_v8 }
 0x288   :  { %1016 = vmatpush.msra.mxu2 %v2049_v11  ;;  %1036 = vmatpush.msra.mxu3 %v2044_v10 }
 0x28a   :  { %1017 = vmatpush.msra.mxu2 %v2063_v13  ;;  %1037 = vmatpush.msra.mxu3 %v2058_v12 }
 0x28c   :  { %1018 = vmatpush.msra.mxu2 %v2077_v15  ;;  %1038 = vmatpush.msra.mxu3 %v2072_v14 }
 0x300   :  { %v270_v57 = vpop.f32.mrf.mxu3  ;;  %v250_v60 = vpop.f32.mrf.mxu2 }
 0x301   :  { %v275_v59 = vrot.slane %v270_v57, 6 }
 0x303   :  { %v276_v61 = vsel %vm80_vm0, %v250_v60, %v275_v59 }
 0x304   :  { %v278_v62 = vadd.f32 %v1622_v58, %v276_v61 }
 0x306   :  { %338 = vrot.lane.b32.xlu1 %v278_v62, %s1947_s24  ;;  %1715 = vtanh.f32 %v278_v62  ;;  %v1625_v16 = vmul.f32 -1.442695, %v278_v62  ;;  %v317_v36 = vrot.slane %v278_v62, 2 }
 0x308   :  { %1717 = vpow2.f32 %v1625_v16  ;;  %v1626_v40 = vmul.f32 -1.442695, %v317_v36 }
 0x30c   :  { %v1716_v63 = vpop.eup %1715 }
 0x30d   :  { %301 = vrot.lane.b32.xlu2 %v1716_v63, %s1946_s23 }
 0x30e   :  { %v1718_v17 = vpop.eup %1717 }
 0x30f   :  { %v282_v18 = vadd.f32 1.0, %v1718_v17 }
 0x311   :  { %1719 = vrcp.f32 %v282_v18  ;;  %v294_v24 = vand.u32 2147483648, %v282_v18  ;;  %vm288_vm5 = vweird.f32 %v282_v18  ;;  %v292_v25 = vand.u32 2147483647, %v282_v18 }
 0x313   :  { %v295_v27 = vor.u32 1.1754944e-38, %v294_v24  ;;  %vm293_vm7 = vcmp.eq.f32.partialorder %v292_v25, 8.507059e+37 }
 0x315   :  { %366 = vrot.lane.b32.xlu2 %v278_v62, %s1948_s25 }
 0x317   :  { %v1720_v19 = vpop.eup %1719 }
 0x318   :  { %v284_v20 = vmul.f32 %v1720_v19, %v282_v18  ;;  %vm289_vm4 = vweird.f32 %v1720_v19 }
 0x319   :  { %vm290_vm6 = vmor %vm288_vm5, %vm289_vm4 }
 0x31a   :  { %v285_v21 = vsub.f32 1.0, %v284_v20 }
 0x31c   :  { %v286_v22 = vmul.f32 %v1720_v19, %v285_v21 }
 0x31e   :  { %v287_v23 = vadd.f32 %v1720_v19, %v286_v22 }
 0x320   :  { %v291_v26 = vsel %vm290_vm6, %v1720_v19, %v287_v23 }
 0x321   :  { %v2190_v29 = vsel %vm293_vm7, %v295_v27, %v291_v26 }
 0x322   :  { %v299_v31 = vmul.f32 %v2190_v29, %v2150_v41 }
 0x367   :  { %v302_v28 = vpop.permute.xlu2 %301 }
 0x368   :  { %v304_v30 = vmul.f32 %v302_v28, %v2190_v29 }
 0x36a   :  { %306 = vrot.lane.b32.xlu0 %v304_v30, %s1948_s25 }
 0x36f   :  { %v367_v45 = vpop.permute.xlu2 %366 }
 0x370   :  { %v368_v41 = vrot.slane %v367_v45, 2 }
 0x372   :  { %361 = vrot.lane.b32.xlu0 %v278_v62, %s1946_s23  ;;  %v1628_v48 = vmul.f32 -1.442695, %v368_v41 }
 0x378   :  { %v339_v35 = vpop.permute.xlu1 %338 }
 0x379   :  { %v340_v39 = vrot.slane %v339_v35, 2 }
 0x37b   :  { %v1627_v42 = vmul.f32 -1.442695, %v340_v39 }
 0x3dc   :  { %v307_v32 = vpop.permute.xlu0 %306 }
 0x3dd   :  { %v2197_v33 = vadd.f32 %v307_v32, %v299_v31 }
 0x3df   :  { %1721 = vtanh.f32 %v2197_v33 }
 0x3e0   :  { %1723 = vpow2.f32 %v1626_v40 }
 0x3e1   :  { %1725 = vpow2.f32 %v1627_v42 }
 0x3e4   :  { %v362_v58 = vpop.permute.xlu0 %361 }
 0x3e5   :  { %v1722_v34 = vpop.eup %1721  ;;  %v363_v59 = vrot.slane %v362_v58, 2 }
 0x3e6   :  { %312 = vrot.lane.b32.xlu1 %v1722_v34, %s1946_s23  ;;  %v1724_v43 = vpop.eup %1723 }
 0x3e7   :  { %v1726_v44 = vpop.eup %1725  ;;  %v322_v46 = vadd.f32 1.0, %v1724_v43 }
 0x3e8   :  { %v345_v47 = vadd.f32 1.0, %v1726_v44 }
 0x3e9   :  { %1727 = vrcp.f32 %v322_v46  ;;  %vm328_vm10 = vweird.f32 %v322_v46  ;;  %v334_v17 = vand.u32 2147483648, %v322_v46  ;;  %v332_v19 = vand.u32 2147483647, %v322_v46 }
 0x3ea   :  { %1729 = vrcp.f32 %v345_v47  ;;  %v357_v16 = vand.u32 2147483648, %v345_v47  ;;  %vm351_vm11 = vweird.f32 %v345_v47  ;;  %v355_v20 = vand.u32 2147483647, %v345_v47 }
 0x3eb   :  { %1731 = vpow2.f32 %v1628_v48  ;;  %v335_v26 = vor.u32 1.1754944e-38, %v334_v17  ;;  %vm333_vm14 = vcmp.eq.f32.partialorder %v332_v19, 8.507059e+37 }
 0x3ec   :  { %v358_v25 = vor.u32 1.1754944e-38, %v357_v16  ;;  %vm356_vm15 = vcmp.eq.f32.partialorder %v355_v20, 8.507059e+37 }
 0x3ef   :  { %v1728_v49 = vpop.eup %1727 }
 0x3f0   :  { %v1730_v50 = vpop.eup %1729  ;;  %v324_v37 = vmul.f32 %v1728_v49, %v322_v46  ;;  %vm329_vm8 = vweird.f32 %v1728_v49 }
 0x3f1   :  { %v347_v53 = vmul.f32 %v1730_v50, %v345_v47  ;;  %v1732_v54 = vpop.eup %1731  ;;  %vm352_vm9 = vweird.f32 %v1730_v50  ;;  %vm330_vm12 = vmor %vm328_vm10, %vm329_vm8 }
 0x3f2   :  { %v373_v55 = vadd.f32 1.0, %v1732_v54  ;;  %v325_v57 = vsub.f32 1.0, %v324_v37  ;;  %vm353_vm13 = vmor %vm351_vm11, %vm352_vm9 }
 0x3f3   :  { %v348_v56 = vsub.f32 1.0, %v347_v53 }
 0x3f4   :  { %1733 = vrcp.f32 %v373_v55  ;;  %v326_v61 = vmul.f32 %v1728_v49, %v325_v57  ;;  %v385_v42 = vand.u32 2147483648, %v373_v55  ;;  %vm379_vm4 = vweird.f32 %v373_v55 }
 0x3f5   :  { %v349_v60 = vmul.f32 %v1730_v50, %v348_v56  ;;  %1735 = vtanh.f32 %v363_v59  ;;  %v383_v43 = vand.u32 2147483647, %v373_v55 }
 0x3f6   :  { %v327_v62 = vadd.f32 %v1728_v49, %v326_v61  ;;  %v386_v46 = vor.u32 1.1754944e-38, %v385_v42 }
 0x3f7   :  { %v350_v63 = vadd.f32 %v1730_v50, %v349_v60  ;;  %vm384_vm6 = vcmp.eq.f32.partialorder %v383_v43, 8.507059e+37 }
 0x3f8   :  { %v331_v21 = vsel %vm330_vm12, %v1728_v49, %v327_v62 }
 0x3f9   :  { %v354_v22 = vsel %vm353_vm13, %v1730_v50, %v350_v63  ;;  %v336_v27 = vsel %vm333_vm14, %v335_v26, %v331_v21 }
 0x3fa   :  { %v1734_v18 = vpop.eup %1733  ;;  %v359_v28 = vsel %vm356_vm15, %v358_v25, %v354_v22 }
 0x3fb   :  { %v1736_v23 = vpop.eup %1735  ;;  %v375_v24 = vmul.f32 %v1734_v18, %v373_v55  ;;  %v389_v32 = vmul.f32 %v359_v28, %v2154_v38  ;;  %vm380_vm1 = vweird.f32 %v1734_v18 }
 0x3fc   :  { %v390_v30 = vmul.f32 %v1736_v23, %v336_v27  ;;  %vm381_vm5 = vmor %vm379_vm4, %vm380_vm1 }
 0x3fd   :  { %v376_v31 = vsub.f32 1.0, %v375_v24 }
 0x3fe   :  { %v2202_v34 = vadd.f32 %v390_v30, %v389_v32 }
 0x3ff   :  { %v377_v35 = vmul.f32 %v1734_v18, %v376_v31 }
 0x400   :  { %1737 = vtanh.f32 %v2202_v34 }
 0x401   :  { %v378_v39 = vadd.f32 %v1734_v18, %v377_v35 }
 0x403   :  { %v382_v44 = vsel %vm381_vm5, %v1734_v18, %v378_v39 }
 0x404   :  { %v387_v38 = vsel %vm384_vm6, %v386_v46, %v382_v44 }
 0x406   :  { %v1738_v45 = vpop.eup %1737 }
 0x407   :  { %v393_v41 = vmul.f32 %v1738_v45, %v387_v38 }
 0x458   :  { %v313_v36 = vpop.permute.xlu1 %312 }
 0x459   :  { %v315_v40 = vmul.f32 %v313_v36, %v2190_v29 }
 0x45b   :  { %395 = vst [vmem:[#allocation1] ss:$4 sm:$0xff] %v315_v40 }
 0x462   :  { %v2206_v47 = vld.sshfl [vmem:[#allocation1] sm:$0xff pattern:$0x73625140] }
 0x463   :  { %403 = vst [vmem:[#allocation1] ss:$4 sm:$0xff] %v393_v41 }
 0x46a   :  { %v2208_v48 = vld.sshfl [vmem:[#allocation1] sm:$0xff pattern:$0x73625140] }
 0x46b   :  { %410 = vst [vmem:[#allocation1] ss:$4 sm:$0xff] %v315_v40 }
 0x472   :  { %v411_v49 = vld.sshfl [vmem:[#allocation1] sm:$0xff pattern:$0x73625140] }
 0x473   :  { %415 = vst [vmem:[#allocation1] ss:$4 sm:$0xff] %v393_v41  ;;  %412 = vrot.lane.b32.xlu2 %v411_v49, %s1948_s25 }
 0x47a   :  { %v416_v29 = vld.sshfl [vmem:[#allocation1] sm:$0xff pattern:$0x73625140] }
 0x47b   :  { %417 = vrot.lane.b32.xlu0 %v416_v29, %s1948_s25 }
 0x4cd   :  { %v413_v50 = vpop.permute.xlu2 %412 }
 0x4ed   :  { %v418_v53 = vpop.permute.xlu0 %417 }
 0x4ee   :  { %v420_v37 = vsel %vm226_vm2, %v413_v50, %v418_v53 }
 0x4ef   :  { %1632 = vmatmul.msk.f32.vlgmr.msrb.gmra.mxu0 %vm33_vm3, %v420_v37  ;;  %1633 = vmatmul.msk.f32.vlgmr.msrb.gmra.mxu1 %vm33_vm3, %v420_v37 }
 0x4f0   :  { %1202 = vmatpush.msrb.mxu0 %v1985_v1  ;;  %1222 = vmatpush.msrb.mxu1 %v1980_v0  ;;  %v1631_v1 = vld [vmem:[%s2558_s0 + $0x8] sm:$0xf] }
 0x4f2   :  { %1203 = vmatpush.msrb.mxu0 %v1997_v3  ;;  %1223 = vmatpush.msrb.mxu1 %v1990_v2 }
 0x4f4   :  { %1204 = vmatpush.msrb.mxu0 %v2007_v5  ;;  %1224 = vmatpush.msrb.mxu1 %v2002_v4 }
 0x4f6   :  { %1205 = vmatpush.msrb.mxu0 %v2021_v7  ;;  %1225 = vmatpush.msrb.mxu1 %v2016_v6 }
 0x4f8   :  { %1206 = vmatpush.msrb.mxu0 %v2035_v9  ;;  %1226 = vmatpush.msrb.mxu1 %v2030_v8 }
 0x4fa   :  { %1207 = vmatpush.msrb.mxu0 %v2049_v11  ;;  %1227 = vmatpush.msrb.mxu1 %v2044_v10 }
 0x4fc   :  { %1208 = vmatpush.msrb.mxu0 %v2063_v13  ;;  %1228 = vmatpush.msrb.mxu1 %v2058_v12 }
 0x4fe   :  { %1209 = vmatpush.msrb.mxu0 %v2077_v15  ;;  %1229 = vmatpush.msrb.mxu1 %v2072_v14 }
 0x56c   :  { %v463_v0 = vpop.f32.mrf.mxu1  ;;  %v443_v3 = vpop.f32.mrf.mxu0 }
 0x56d   :  { %v468_v2 = vrot.slane %v463_v0, 6 }
 0x56f   :  { %v469_v4 = vsel %vm80_vm0, %v443_v3, %v468_v2 }
 0x570   :  { %v471_v5 = vadd.f32 %v1631_v1, %v469_v4 }
 0x572   :  { %531 = vrot.lane.b32.xlu0 %v471_v5, %s1947_s24  ;;  %1739 = vtanh.f32 %v471_v5  ;;  %v1634_v7 = vmul.f32 -1.442695, %v471_v5  ;;  %v510_v23 = vrot.slane %v471_v5, 2 }
 0x574   :  { %1741 = vpow2.f32 %v1634_v7  ;;  %v1635_v25 = vmul.f32 -1.442695, %v510_v23 }
 0x578   :  { %v1740_v6 = vpop.eup %1739 }
 0x579   :  { %494 = vrot.lane.b32.xlu1 %v1740_v6, %s1946_s23 }
 0x57a   :  { %v1742_v8 = vpop.eup %1741 }
 0x57b   :  { %v475_v9 = vadd.f32 1.0, %v1742_v8 }
 0x57d   :  { %1743 = vrcp.f32 %v475_v9  ;;  %v487_v59 = vand.u32 2147483648, %v475_v9  ;;  %vm481_vm8 = vweird.f32 %v475_v9  ;;  %v485_v60 = vand.u32 2147483647, %v475_v9 }
 0x57f   :  { %v488_v62 = vor.u32 1.1754944e-38, %v487_v59  ;;  %vm486_vm10 = vcmp.eq.f32.partialorder %v485_v60, 8.507059e+37 }
 0x581   :  { %559 = vrot.lane.b32.xlu1 %v471_v5, %s1948_s25 }
 0x583   :  { %v1744_v54 = vpop.eup %1743 }
 0x584   :  { %v477_v55 = vmul.f32 %v1744_v54, %v475_v9  ;;  %vm482_vm7 = vweird.f32 %v1744_v54 }
 0x585   :  { %vm483_vm9 = vmor %vm481_vm8, %vm482_vm7 }
 0x586   :  { %v478_v56 = vsub.f32 1.0, %v477_v55 }
 0x588   :  { %v479_v57 = vmul.f32 %v1744_v54, %v478_v56 }
 0x58a   :  { %v480_v58 = vadd.f32 %v1744_v54, %v479_v57 }
 0x58c   :  { %v484_v61 = vsel %vm483_vm9, %v1744_v54, %v480_v58 }
 0x58d   :  { %v2238_v16 = vsel %vm486_vm10, %v488_v62, %v484_v61 }
 0x58e   :  { %v492_v18 = vmul.f32 %v2238_v16, %v2197_v33 }
 0x5e4   :  { %v532_v22 = vpop.permute.xlu0 %531 }
 0x5e5   :  { %v533_v24 = vrot.slane %v532_v22, 2 }
 0x5e7   :  { %v1636_v26 = vmul.f32 -1.442695, %v533_v24 }
 0x5eb   :  { %v495_v63 = vpop.permute.xlu1 %494 }
 0x5ec   :  { %v497_v17 = vmul.f32 %v495_v63, %v2238_v16 }
 0x5ee   :  { %499 = vrot.lane.b32.xlu2 %v497_v17, %s1948_s25 }
 0x5f3   :  { %v560_v30 = vpop.permute.xlu1 %559 }
 0x5f4   :  { %v561_v32 = vrot.slane %v560_v30, 2 }
 0x5f6   :  { %554 = vrot.lane.b32.xlu2 %v471_v5, %s1946_s23  ;;  %v1637_v35 = vmul.f32 -1.442695, %v561_v32  ;;  %v1885_v32 = vld [vmem:[%s2559_s1 + $0x60] sm:$0xff] }
 0x648   :  { %v500_v19 = vpop.permute.xlu2 %499 }
 0x649   :  { %v2245_v20 = vadd.f32 %v500_v19, %v492_v18 }
 0x64b   :  { %1745 = vtanh.f32 %v2245_v20 }
 0x64c   :  { %1747 = vpow2.f32 %v1635_v25 }
 0x64d   :  { %1749 = vpow2.f32 %v1636_v26 }
 0x650   :  { %v555_v38 = vpop.permute.xlu2 %554 }
 0x651   :  { %v1746_v21 = vpop.eup %1745  ;;  %v556_v41 = vrot.slane %v555_v38, 2 }
 0x652   :  { %505 = vrot.lane.b32.xlu0 %v1746_v21, %s1946_s23  ;;  %v1748_v27 = vpop.eup %1747 }
 0x653   :  { %v1750_v28 = vpop.eup %1749  ;;  %v515_v31 = vadd.f32 1.0, %v1748_v27 }
 0x654   :  { %v538_v33 = vadd.f32 1.0, %v1750_v28 }
 0x655   :  { %1751 = vrcp.f32 %v515_v31  ;;  %vm521_vm13 = vweird.f32 %v515_v31  ;;  %v527_v0 = vand.u32 2147483648, %v515_v31  ;;  %v525_v2 = vand.u32 2147483647, %v515_v31 }
 0x656   :  { %1753 = vrcp.f32 %v538_v33  ;;  %v550_v37 = vand.u32 2147483648, %v538_v33  ;;  %vm544_vm14 = vweird.f32 %v538_v33  ;;  %v548_v3 = vand.u32 2147483647, %v538_v33 }
 0x657   :  { %1755 = vpow2.f32 %v1637_v35  ;;  %v528_v9 = vor.u32 1.1754944e-38, %v527_v0  ;;  %vm526_vm4 = vcmp.eq.f32.partialorder %v525_v2, 8.507059e+37  ;;  %v1886_v35 = vld [vmem:[%s2559_s1 + $0x68] sm:$0xff] }
 0x658   :  { %v551_v7 = vor.u32 1.1754944e-38, %v550_v37  ;;  %vm549_vm5 = vcmp.eq.f32.partialorder %v548_v3, 8.507059e+37 }
 0x65b   :  { %v1752_v36 = vpop.eup %1751 }
 0x65c   :  { %v1754_v39 = vpop.eup %1753  ;;  %v517_v42 = vmul.f32 %v1752_v36, %v515_v31  ;;  %vm522_vm11 = vweird.f32 %v1752_v36  ;;  %v1883_v31 = vld [vmem:[%s2559_s1 + $0x70] sm:$0xff] }
 0x65d   :  { %v540_v40 = vmul.f32 %v1754_v39, %v538_v33  ;;  %v1756_v43 = vpop.eup %1755  ;;  %vm545_vm12 = vweird.f32 %v1754_v39  ;;  %vm523_vm15 = vmor %vm521_vm13, %vm522_vm11  ;;  %v1884_v33 = vld [vmem:[%s2559_s1 + $0x78] sm:$0xff] }
 0x65e   :  { %v566_v45 = vadd.f32 1.0, %v1756_v43  ;;  %v518_v46 = vsub.f32 1.0, %v517_v42  ;;  %vm546_vm1 = vmor %vm544_vm14, %vm545_vm12  ;;  %v1890_v42 = vld [vmem:[%s2559_s1 + $0x48] sm:$0xff]  ;;  %v1891_v43 = vld [vmem:[%s2559_s1 + $0x30] sm:$0xff] }
 0x65f   :  { %v541_v44 = vsub.f32 1.0, %v540_v40  ;;  %v1889_v40 = vld [vmem:[%s2559_s1 + $0x40] sm:$0xff] }
 0x660   :  { %1757 = vrcp.f32 %v566_v45  ;;  %v519_v29 = vmul.f32 %v1752_v36, %v518_v46  ;;  %v578_v17 = vand.u32 2147483648, %v566_v45  ;;  %vm572_vm7 = vweird.f32 %v566_v45  ;;  %v1640_v46 = vld [vmem:[%s2558_s0 + $0xc] sm:$0xf] }
 0x661   :  { %v542_v49 = vmul.f32 %v1754_v39, %v541_v44  ;;  %1759 = vtanh.f32 %v556_v41  ;;  %v576_v18 = vand.u32 2147483647, %v566_v45  ;;  %v1892_v44 = vld [vmem:[%s2559_s1 + $0x38] sm:$0xff] }
 0x662   :  { %v520_v50 = vadd.f32 %v1752_v36, %v519_v29  ;;  %v579_v22 = vor.u32 1.1754944e-38, %v578_v17 }
 0x663   :  { %v543_v53 = vadd.f32 %v1754_v39, %v542_v49  ;;  %vm577_vm9 = vcmp.eq.f32.partialorder %v576_v18, 8.507059e+37 }
 0x664   :  { %v524_v4 = vsel %vm523_vm15, %v1752_v36, %v520_v50  ;;  %v1887_v36 = vld [vmem:[%s2559_s1 + $0x50] sm:$0xff] }
 0x665   :  { %v547_v5 = vsel %vm546_vm1, %v1754_v39, %v543_v53  ;;  %v529_v54 = vsel %vm526_vm4, %v528_v9, %v524_v4  ;;  %v1888_v39 = vld [vmem:[%s2559_s1 + $0x58] sm:$0xff] }
 0x666   :  { %v1758_v1 = vpop.eup %1757  ;;  %v552_v55 = vsel %vm549_vm5, %v551_v7, %v547_v5 }
 0x667   :  { %v1760_v6 = vpop.eup %1759  ;;  %v568_v8 = vmul.f32 %v1758_v1, %v566_v45  ;;  %v582_v58 = vmul.f32 %v552_v55, %v2202_v34  ;;  %vm573_vm6 = vweird.f32 %v1758_v1 }
 0x668   :  { %v583_v56 = vmul.f32 %v1760_v6, %v529_v54  ;;  %vm574_vm8 = vmor %vm572_vm7, %vm573_vm6 }
 0x669   :  { %v569_v57 = vsub.f32 1.0, %v568_v8 }
 0x66a   :  { %v2250_v59 = vadd.f32 %v583_v56, %v582_v58 }
 0x66b   :  { %v570_v60 = vmul.f32 %v1758_v1, %v569_v57 }
 0x66c   :  { %1761 = vtanh.f32 %v2250_v59 }
 0x66d   :  { %v571_v62 = vadd.f32 %v1758_v1, %v570_v60 }
 0x66f   :  { %v575_v19 = vsel %vm574_vm8, %v1758_v1, %v571_v62 }
 0x670   :  { %v580_v34 = vsel %vm577_vm9, %v579_v22, %v575_v19 }
 0x672   :  { %v1762_v21 = vpop.eup %1761 }
 0x673   :  { %v586_v23 = vmul.f32 %v1762_v21, %v580_v34 }
 0x6c4   :  { %v506_v61 = vpop.permute.xlu0 %505 }
 0x6c5   :  { %v508_v63 = vmul.f32 %v506_v61, %v2238_v16 }
 0x6c7   :  { %588 = vst [vmem:[#allocation1] ss:$4 sm:$0xff] %v508_v63 }
 0x6ce   :  { %v2254_v24 = vld.sshfl [vmem:[#allocation1] sm:$0xff pattern:$0x73625140] }
 0x6cf   :  { %596 = vst [vmem:[#allocation1] ss:$4 sm:$0xff] %v586_v23 }
 0x6d6   :  { %v2256_v25 = vld.sshfl [vmem:[#allocation1] sm:$0xff pattern:$0x73625140] }
 0x6d7   :  { %603 = vst [vmem:[#allocation1] ss:$4 sm:$0xff] %v508_v63 }
 0x6de   :  { %v604_v26 = vld.sshfl [vmem:[#allocation1] sm:$0xff pattern:$0x73625140] }
 0x6df   :  { %608 = vst [vmem:[#allocation1] ss:$4 sm:$0xff] %v586_v23  ;;  %605 = vrot.lane.b32.xlu1 %v604_v26, %s1948_s25 }
 0x6e6   :  { %v609_v16 = vld.sshfl [vmem:[#allocation1] sm:$0xff pattern:$0x73625140] }
 0x6e7   :  { %610 = vrot.lane.b32.xlu2 %v609_v16, %s1948_s25 }
 0x741   :  { %v611_v27 = vpop.permute.xlu2 %610 }
 0x751   :  { %v606_v28 = vpop.permute.xlu1 %605 }
 0x752   :  { %v613_v30 = vsel %vm226_vm2, %v606_v28, %v611_v27 }
 0x753   :  { %1641 = vmatmul.msk.f32.vlgmr.msrb.gmra.mxu2 %vm33_vm3, %v613_v30  ;;  %1642 = vmatmul.msk.f32.vlgmr.msrb.gmra.mxu3 %vm33_vm3, %v613_v30 }
 0x754   :  { %1393 = vmatpush.msrb.mxu2 %v1883_v31  ;;  %1413 = vmatpush.msrb.mxu3 %v1884_v33 }
 0x756   :  { %1394 = vmatpush.msrb.mxu2 %v1885_v32  ;;  %1414 = vmatpush.msrb.mxu3 %v1886_v35 }
 0x758   :  { %1395 = vmatpush.msrb.mxu2 %v1887_v36  ;;  %1415 = vmatpush.msrb.mxu3 %v1888_v39 }
 0x75a   :  { %1396 = vmatpush.msrb.mxu2 %v1889_v40  ;;  %1416 = vmatpush.msrb.mxu3 %v1890_v42 }
 0x75c   :  { %1397 = vmatpush.msrb.mxu2 %v1891_v43  ;;  %1417 = vmatpush.msrb.mxu3 %v1892_v44 }
 0x75e   :  { %1398 = vmatpush.msrb.mxu2 %v2049_v11  ;;  %1418 = vmatpush.msrb.mxu3 %v2044_v10 }
 0x760   :  { %1399 = vmatpush.msrb.mxu2 %v2063_v13  ;;  %1419 = vmatpush.msrb.mxu3 %v2058_v12 }
 0x762   :  { %1400 = vmatpush.msrb.mxu2 %v2077_v15  ;;  %1420 = vmatpush.msrb.mxu3 %v2072_v14 }
 0x7d6   :  { %v656_v45 = vpop.f32.mrf.mxu3  ;;  %v636_v41 = vpop.f32.mrf.mxu2 }
 0x7d7   :  { %v661_v38 = vrot.slane %v656_v45, 6 }
 0x7d9   :  { %v662_v49 = vsel %vm80_vm0, %v636_v41, %v661_v38 }
 0x7da   :  { %v664_v11 = vadd.f32 %v1640_v46, %v662_v49 }
 0x7dc   :  { %724 = vrot.lane.b32.xlu2 %v664_v11, %s1947_s24  ;;  %1763 = vtanh.f32 %v664_v11  ;;  %v1643_v12 = vmul.f32 -1.442695, %v664_v11  ;;  %v703_v56 = vrot.slane %v664_v11, 2 }
 0x7de   :  { %1765 = vpow2.f32 %v1643_v12  ;;  %v1644_v58 = vmul.f32 -1.442695, %v703_v56 }
 0x7e2   :  { %v1764_v10 = vpop.eup %1763 }
 0x7e3   :  { %687 = vrot.lane.b32.xlu0 %v1764_v10, %s1946_s23 }
 0x7e4   :  { %v1766_v13 = vpop.eup %1765 }
 0x7e5   :  { %v668_v14 = vadd.f32 1.0, %v1766_v13 }
 0x7e7   :  { %1767 = vrcp.f32 %v668_v14  ;;  %v680_v0 = vand.u32 2147483648, %v668_v14  ;;  %vm674_vm11 = vweird.f32 %v668_v14  ;;  %v678_v1 = vand.u32 2147483647, %v668_v14 }
 0x7e9   :  { %v681_v3 = vor.u32 1.1754944e-38, %v680_v0  ;;  %vm679_vm13 = vcmp.eq.f32.partialorder %v678_v1, 8.507059e+37 }
 0x7eb   :  { %752 = vrot.lane.b32.xlu0 %v664_v11, %s1948_s25 }
 0x7ed   :  { %v1768_v15 = vpop.eup %1767 }
 0x7ee   :  { %v670_v29 = vmul.f32 %v1768_v15, %v668_v14  ;;  %vm675_vm10 = vweird.f32 %v1768_v15 }
 0x7ef   :  { %vm676_vm12 = vmor %vm674_vm11, %vm675_vm10 }
 0x7f0   :  { %v671_v50 = vsub.f32 1.0, %v670_v29 }
 0x7f2   :  { %v672_v53 = vmul.f32 %v1768_v15, %v671_v50 }
 0x7f4   :  { %v673_v37 = vadd.f32 %v1768_v15, %v672_v53 }
 0x7f6   :  { %v677_v2 = vsel %vm676_vm12, %v1768_v15, %v673_v37 }
 0x7f7   :  { %v2306_v5 = vsel %vm679_vm13, %v681_v3, %v677_v2 }
 0x7f8   :  { %v685_v7 = vmul.f32 %v2306_v5, %v2245_v20 }
 0x836   :  { %v725_v55 = vpop.permute.xlu2 %724 }
 0x837   :  { %v726_v57 = vrot.slane %v725_v55, 2 }
 0x839   :  { %v1645_v60 = vmul.f32 -1.442695, %v726_v57 }
 0x855   :  { %v688_v4 = vpop.permute.xlu0 %687 }
 0x856   :  { %v690_v6 = vmul.f32 %v688_v4, %v2306_v5 }
 0x858   :  { %692 = vrot.lane.b32.xlu1 %v690_v6, %s1948_s25 }
 0x85d   :  { %v753_v63 = vpop.permute.xlu0 %752 }
 0x85e   :  { %v754_v18 = vrot.slane %v753_v63, 2 }
 0x860   :  { %747 = vrot.lane.b32.xlu1 %v664_v11, %s1946_s23  ;;  %v1646_v19 = vmul.f32 -1.442695, %v754_v18 }
 0x8ca   :  { %v693_v8 = vpop.permute.xlu1 %692 }
 0x8cb   :  { %v2313_v9 = vadd.f32 %v693_v8, %v685_v7 }
 0x8cd   :  { %1769 = vtanh.f32 %v2313_v9 }
 0x8ce   :  { %1771 = vpow2.f32 %v1644_v58 }
 0x8cf   :  { %1773 = vpow2.f32 %v1645_v60 }
 0x8d2   :  { %v748_v30 = vpop.permute.xlu1 %747 }
 0x8d3   :  { %v1770_v54 = vpop.eup %1769  ;;  %v749_v31 = vrot.slane %v748_v30, 2 }
 0x8d4   :  { %698 = vrot.lane.b32.xlu2 %v1770_v54, %s1946_s23  ;;  %v1772_v61 = vpop.eup %1771 }
 0x8d5   :  { %v1774_v62 = vpop.eup %1773  ;;  %v708_v17 = vadd.f32 1.0, %v1772_v61  ;;  %v1649_v61 = vld [vmem:[%s2558_s0 + $0x10] sm:$0xf] }
 0x8d6   :  { %v731_v20 = vadd.f32 1.0, %v1774_v62 }
 0x8d7   :  { %1775 = vrcp.f32 %v708_v17  ;;  %vm714_vm1 = vweird.f32 %v708_v17  ;;  %v720_v40 = vand.u32 2147483648, %v708_v17  ;;  %v718_v43 = vand.u32 2147483647, %v708_v17 }
 0x8d8   :  { %1777 = vrcp.f32 %v731_v20  ;;  %v743_v39 = vand.u32 2147483648, %v731_v20  ;;  %vm737_vm4 = vweird.f32 %v731_v20  ;;  %v741_v44 = vand.u32 2147483647, %v731_v20 }
 0x8d9   :  { %1779 = vpow2.f32 %v1646_v19  ;;  %v721_v11 = vor.u32 1.1754944e-38, %v720_v40  ;;  %vm719_vm7 = vcmp.eq.f32.partialorder %v718_v43, 8.507059e+37 }
 0x8da   :  { %v744_v41 = vor.u32 1.1754944e-38, %v743_v39  ;;  %vm742_vm8 = vcmp.eq.f32.partialorder %v741_v44, 8.507059e+37 }
 0x8dd   :  { %v1776_v21 = vpop.eup %1775 }
 0x8de   :  { %v1778_v22 = vpop.eup %1777  ;;  %v710_v23 = vmul.f32 %v1776_v21, %v708_v17  ;;  %vm715_vm14 = vweird.f32 %v1776_v21 }
 0x8df   :  { %v733_v34 = vmul.f32 %v1778_v22, %v731_v20  ;;  %v1780_v26 = vpop.eup %1779  ;;  %vm738_vm15 = vweird.f32 %v1778_v22  ;;  %vm716_vm5 = vmor %vm714_vm1, %vm715_vm14 }
 0x8e0   :  { %v759_v27 = vadd.f32 1.0, %v1780_v26  ;;  %v711_v28 = vsub.f32 1.0, %v710_v23  ;;  %vm739_vm6 = vmor %vm737_vm4, %vm738_vm15 }
 0x8e1   :  { %v734_v16 = vsub.f32 1.0, %v733_v34 }
 0x8e2   :  { %1781 = vrcp.f32 %v759_v27  ;;  %v712_v32 = vmul.f32 %v1776_v21, %v711_v28  ;;  %v771_v1 = vand.u32 2147483648, %v759_v27  ;;  %vm765_vm10 = vweird.f32 %v759_v27 }
 0x8e3   :  { %v735_v33 = vmul.f32 %v1778_v22, %v734_v16  ;;  %1783 = vtanh.f32 %v749_v31  ;;  %v769_v2 = vand.u32 2147483647, %v759_v27 }
 0x8e4   :  { %v713_v35 = vadd.f32 %v1776_v21, %v712_v32  ;;  %v772_v6 = vor.u32 1.1754944e-38, %v771_v1 }
 0x8e5   :  { %v736_v36 = vadd.f32 %v1778_v22, %v735_v33  ;;  %vm770_vm12 = vcmp.eq.f32.partialorder %v769_v2, 8.507059e+37 }
 0x8e6   :  { %v717_v45 = vsel %vm716_vm5, %v1776_v21, %v713_v35 }
 0x8e7   :  { %v740_v46 = vsel %vm739_vm6, %v1778_v22, %v736_v36  ;;  %v722_v10 = vsel %vm719_vm7, %v721_v11, %v717_v45 }
 0x8e8   :  { %v1782_v42 = vpop.eup %1781  ;;  %v745_v12 = vsel %vm742_vm8, %v744_v41, %v740_v46 }
 0x8e9   :  { %v1784_v38 = vpop.eup %1783  ;;  %v761_v49 = vmul.f32 %v1782_v42, %v759_v27  ;;  %v775_v15 = vmul.f32 %v745_v12, %v2250_v59  ;;  %vm766_vm9 = vweird.f32 %v1782_v42 }
 0x8ea   :  { %v776_v13 = vmul.f32 %v1784_v38, %v722_v10  ;;  %vm767_vm11 = vmor %vm765_vm10, %vm766_vm9 }
 0x8eb   :  { %v762_v14 = vsub.f32 1.0, %v761_v49 }
 0x8ec   :  { %v2318_v29 = vadd.f32 %v776_v13, %v775_v15 }
 0x8ed   :  { %v763_v50 = vmul.f32 %v1782_v42, %v762_v14 }
 0x8ee   :  { %1785 = vtanh.f32 %v2318_v29 }
 0x8ef   :  { %v764_v37 = vadd.f32 %v1782_v42, %v763_v50 }
 0x8f1   :  { %v768_v3 = vsel %vm767_vm11, %v1782_v42, %v764_v37 }
 0x8f2   :  { %v773_v59 = vsel %vm770_vm12, %v772_v6, %v768_v3 }
 0x8f4   :  { %v1786_v4 = vpop.eup %1785 }
 0x8f5   :  { %v779_v7 = vmul.f32 %v1786_v4, %v773_v59 }
 0x92e   :  { %v699_v53 = vpop.permute.xlu2 %698 }
 0x92f   :  { %v701_v0 = vmul.f32 %v699_v53, %v2306_v5 }
 0x931   :  { %781 = vst [vmem:[#allocation1] ss:$4 sm:$0xff] %v701_v0 }
 0x938   :  { %v2322_v8 = vld.sshfl [vmem:[#allocation1] sm:$0xff pattern:$0x73625140] }
 0x939   :  { %789 = vst [vmem:[#allocation1] ss:$4 sm:$0xff] %v779_v7 }
 0x940   :  { %v2324_v54 = vld.sshfl [vmem:[#allocation1] sm:$0xff pattern:$0x73625140] }
 0x941   :  { %796 = vst [vmem:[#allocation1] ss:$4 sm:$0xff] %v701_v0 }
 0x948   :  { %v797_v55 = vld.sshfl [vmem:[#allocation1] sm:$0xff pattern:$0x73625140] }
 0x949   :  { %798 = vrot.lane.b32.xlu0 %v797_v55, %s1948_s25  ;;  %801 = vst [vmem:[#allocation1] ss:$4 sm:$0xff] %v779_v7 }
 0x950   :  { %v802_v5 = vld.sshfl [vmem:[#allocation1] sm:$0xff pattern:$0x73625140] }
 0x951   :  { %803 = vrot.lane.b32.xlu1 %v802_v5, %s1948_s25 }
 0x9bb   :  { %v799_v56 = vpop.permute.xlu0 %798 }
 0x9c3   :  { %v804_v57 = vpop.permute.xlu1 %803 }
 0x9c4   :  { %v806_v58 = vsel %vm226_vm2, %v799_v56, %v804_v57 }
 0x9c5   :  { %1650 = vmatmul.msk.f32.vlgmr.msra.gmra.mxu0 %vm33_vm3, %v806_v58  ;;  %1651 = vmatmul.msk.f32.vlgmr.msra.gmra.mxu1 %vm33_vm3, %v806_v58 }
 0xa42   :  { %v849_v60 = vpop.f32.mrf.mxu1  ;;  %v829_v63 = vpop.f32.mrf.mxu0 }
 0xa43   :  { %v854_v62 = vrot.slane %v849_v60, 6 }
 0xa45   :  { %v855_v17 = vsel %vm80_vm0, %v829_v63, %v854_v62 }
 0xa46   :  { %v857_v20 = vadd.f32 %v1649_v61, %v855_v17 }
 0xa48   :  { %917 = vrot.lane.b32.xlu1 %v857_v20, %s1947_s24  ;;  %1787 = vtanh.f32 %v857_v20  ;;  %v1652_v19 = vmul.f32 -1.442695, %v857_v20  ;;  %v896_v45 = vrot.slane %v857_v20, 2 }
 0xa4a   :  { %1789 = vpow2.f32 %v1652_v19  ;;  %v1653_v38 = vmul.f32 -1.442695, %v896_v45 }
 0xa4e   :  { %v1788_v18 = vpop.eup %1787 }
 0xa4f   :  { %880 = vrot.lane.b32.xlu2 %v1788_v18, %s1946_s23 }
 0xa50   :  { %v1790_v21 = vpop.eup %1789 }
 0xa51   :  { %v861_v22 = vadd.f32 1.0, %v1790_v21 }
 0xa53   :  { %1791 = vrcp.f32 %v861_v22  ;;  %v873_v28 = vand.u32 2147483648, %v861_v22  ;;  %vm867_vm14 = vweird.f32 %v861_v22  ;;  %v871_v30 = vand.u32 2147483647, %v861_v22 }
 0xa55   :  { %v874_v33 = vor.u32 1.1754944e-38, %v873_v28  ;;  %vm872_vm1 = vcmp.eq.f32.partialorder %v871_v30, 8.507059e+37 }
 0xa57   :  { %945 = vrot.lane.b32.xlu2 %v857_v20, %s1948_s25 }
 0xa59   :  { %v1792_v34 = vpop.eup %1791 }
 0xa5a   :  { %v863_v23 = vmul.f32 %v1792_v34, %v861_v22  ;;  %vm868_vm13 = vweird.f32 %v1792_v34 }
 0xa5b   :  { %vm869_vm15 = vmor %vm867_vm14, %vm868_vm13 }
 0xa5c   :  { %v864_v26 = vsub.f32 1.0, %v863_v23 }
 0xa5e   :  { %v865_v16 = vmul.f32 %v1792_v34, %v864_v26 }
 0xa60   :  { %v866_v27 = vadd.f32 %v1792_v34, %v865_v16 }
 0xa62   :  { %v870_v31 = vsel %vm869_vm15, %v1792_v34, %v866_v27 }
 0xa63   :  { %v2338_v35 = vsel %vm872_vm1, %v874_v33, %v870_v31 }
 0xa64   :  { %v878_v39 = vmul.f32 %v2338_v35, %v2313_v9 }
 0xaa9   :  { %v881_v32 = vpop.permute.xlu2 %880 }
 0xaaa   :  { %v883_v36 = vmul.f32 %v881_v32, %v2338_v35 }
 0xaac   :  { %885 = vrot.lane.b32.xlu0 %v883_v36, %s1948_s25 }
 0xab1   :  { %v946_v10 = vpop.permute.xlu2 %945 }
 0xab2   :  { %v947_v9 = vrot.slane %v946_v10, 2  ;;  %v1658_v10 = vld [vmem:[%s2558_s0 + $0x14] sm:$0xf] }
 0xab4   :  { %940 = vrot.lane.b32.xlu0 %v857_v20, %s1946_s23  ;;  %v1655_v14 = vmul.f32 -1.442695, %v947_v9 }
 0xaba   :  { %v918_v44 = vpop.permute.xlu1 %917 }
 0xabb   :  { %v919_v46 = vrot.slane %v918_v44, 2 }
 0xabd   :  { %v1654_v41 = vmul.f32 -1.442695, %v919_v46 }
 0xb1e   :  { %v886_v40 = vpop.permute.xlu0 %885 }
 0xb1f   :  { %v2345_v42 = vadd.f32 %v886_v40, %v878_v39 }
 0xb21   :  { %1793 = vtanh.f32 %v2345_v42 }
 0xb22   :  { %1795 = vpow2.f32 %v1653_v38 }
 0xb23   :  { %1797 = vpow2.f32 %v1654_v41 }
 0xb26   :  { %v941_v4 = vpop.permute.xlu0 %940 }
 0xb27   :  { %v1794_v43 = vpop.eup %1793  ;;  %v942_v6 = vrot.slane %v941_v4, 2 }
 0xb28   :  { %891 = vrot.lane.b32.xlu1 %v1794_v43, %s1946_s23  ;;  %v1796_v49 = vpop.eup %1795 }
 0xb29   :  { %v1798_v11 = vpop.eup %1797  ;;  %v901_v12 = vadd.f32 1.0, %v1796_v49 }
 0xb2a   :  { %v924_v13 = vadd.f32 1.0, %v1798_v11 }
 0xb2b   :  { %1799 = vrcp.f32 %v901_v12  ;;  %vm907_vm6 = vweird.f32 %v901_v12  ;;  %v913_v57 = vand.u32 2147483648, %v901_v12  ;;  %v911_v60 = vand.u32 2147483647, %v901_v12 }
 0xb2c   :  { %1801 = vrcp.f32 %v924_v13  ;;  %v936_v56 = vand.u32 2147483648, %v924_v13  ;;  %vm930_vm7 = vweird.f32 %v924_v13  ;;  %v934_v61 = vand.u32 2147483647, %v924_v13 }
 0xb2d   :  { %1803 = vpow2.f32 %v1655_v14  ;;  %v914_v19 = vor.u32 1.1754944e-38, %v913_v57  ;;  %vm912_vm10 = vcmp.eq.f32.partialorder %v911_v60, 8.507059e+37 }
 0xb2e   :  { %v937_v18 = vor.u32 1.1754944e-38, %v936_v56  ;;  %vm935_vm11 = vcmp.eq.f32.partialorder %v934_v61, 8.507059e+37 }
 0xb31   :  { %v1800_v15 = vpop.eup %1799 }
 0xb32   :  { %v1802_v50 = vpop.eup %1801  ;;  %v903_v37 = vmul.f32 %v1800_v15, %v901_v12  ;;  %vm908_vm4 = vweird.f32 %v1800_v15 }
 0xb33   :  { %v926_v53 = vmul.f32 %v1802_v50, %v924_v13  ;;  %v1804_v0 = vpop.eup %1803  ;;  %vm931_vm5 = vweird.f32 %v1802_v50  ;;  %vm909_vm8 = vmor %vm907_vm6, %vm908_vm4 }
 0xb34   :  { %v952_v1 = vadd.f32 1.0, %v1804_v0  ;;  %v904_v3 = vsub.f32 1.0, %v903_v37  ;;  %vm932_vm9 = vmor %vm930_vm7, %vm931_vm5 }
 0xb35   :  { %v927_v2 = vsub.f32 1.0, %v926_v53 }
 0xb36   :  { %1805 = vrcp.f32 %v952_v1  ;;  %v905_v7 = vmul.f32 %v1800_v15, %v904_v3  ;;  %v964_v33 = vand.u32 2147483648, %v952_v1  ;;  %vm958_vm13 = vweird.f32 %v952_v1 }
 0xb37   :  { %v928_v59 = vmul.f32 %v1802_v50, %v927_v2  ;;  %1807 = vtanh.f32 %v942_v6  ;;  %v962_v32 = vand.u32 2147483647, %v952_v1 }
 0xb38   :  { %v906_v55 = vadd.f32 %v1800_v15, %v905_v7  ;;  %v965_v40 = vor.u32 1.1754944e-38, %v964_v33 }
 0xb39   :  { %v929_v5 = vadd.f32 %v1802_v50, %v928_v59  ;;  %vm963_vm15 = vcmp.eq.f32.partialorder %v962_v32, 8.507059e+37 }
 0xb3a   :  { %v910_v62 = vsel %vm909_vm8, %v1800_v15, %v906_v55 }
 0xb3b   :  { %v933_v63 = vsel %vm932_vm9, %v1802_v50, %v929_v5  ;;  %v915_v21 = vsel %vm912_vm10, %v914_v19, %v910_v62 }
 0xb3c   :  { %v1806_v58 = vpop.eup %1805  ;;  %v938_v22 = vsel %vm935_vm11, %v937_v18, %v933_v63 }
 0xb3d   :  { %v1808_v17 = vpop.eup %1807  ;;  %v954_v20 = vmul.f32 %v1806_v58, %v952_v1  ;;  %v968_v26 = vmul.f32 %v938_v22, %v2318_v29  ;;  %vm959_vm12 = vweird.f32 %v1806_v58 }
 0xb3e   :  { %v969_v34 = vmul.f32 %v1808_v17, %v915_v21  ;;  %vm960_vm14 = vmor %vm958_vm13, %vm959_vm12 }
 0xb3f   :  { %v955_v23 = vsub.f32 1.0, %v954_v20 }
 0xb40   :  { %v2350_v16 = vadd.f32 %v969_v34, %v968_v26 }
 0xb41   :  { %v956_v27 = vmul.f32 %v1806_v58, %v955_v23 }
 0xb42   :  { %1809 = vtanh.f32 %v2350_v16 }
 0xb43   :  { %v957_v30 = vadd.f32 %v1806_v58, %v956_v27 }
 0xb45   :  { %v961_v36 = vsel %vm960_vm14, %v1806_v58, %v957_v30 }
 0xb46   :  { %v966_v29 = vsel %vm963_vm15, %v965_v40, %v961_v36 }
 0xb48   :  { %v1810_v39 = vpop.eup %1809 }
 0xb49   :  { %v972_v43 = vmul.f32 %v1810_v39, %v966_v29 }
 0xb9a   :  { %v892_v28 = vpop.permute.xlu1 %891 }
 0xb9b   :  { %v894_v31 = vmul.f32 %v892_v28, %v2338_v35 }
 0xb9d   :  { %974 = vst [vmem:[#allocation1] ss:$4 sm:$0xff] %v894_v31 }
 0xba4   :  { %v2354_v44 = vld.sshfl [vmem:[#allocation1] sm:$0xff pattern:$0x73625140] }
 0xba5   :  { %981 = vst [vmem:[#allocation1] ss:$4 sm:$0xff] %v972_v43 }
 0xbac   :  { %v2356_v45 = vld.sshfl [vmem:[#allocation1] sm:$0xff pattern:$0x73625140] }
 0xbad   :  { %987 = vst [vmem:[#allocation1] ss:$4 sm:$0xff] %v894_v31 }
 0xbb4   :  { %v988_v46 = vld.sshfl [vmem:[#allocation1] sm:$0xff pattern:$0x73625140] }
 0xbb5   :  { %989 = vrot.lane.b32.xlu2 %v988_v46, %s1948_s25  ;;  %992 = vst [vmem:[#allocation1] ss:$4 sm:$0xff] %v972_v43 }
 0xbbc   :  { %v993_v35 = vld.sshfl [vmem:[#allocation1] sm:$0xff pattern:$0x73625140] }
 0xbbd   :  { %994 = vrot.lane.b32.xlu0 %v993_v35, %s1948_s25 }
 0xc0f   :  { %v990_v38 = vpop.permute.xlu2 %989 }
 0xc2f   :  { %v995_v41 = vpop.permute.xlu0 %994 }
 0xc30   :  { %v997_v49 = vsel %vm226_vm2, %v990_v38, %v995_v41 }
 0xc31   :  { %1659 = vmatmul.msk.f32.vlgmr.msra.gmra.mxu2 %vm33_vm3, %v997_v49  ;;  %1660 = vmatmul.msk.f32.vlgmr.msra.gmra.mxu3 %vm33_vm3, %v997_v49 }
 0xcb4   :  { %v1040_v11 = vpop.f32.mrf.mxu3  ;;  %v1020_v9 = vpop.f32.mrf.mxu2 }
 0xcb5   :  { %v1045_v12 = vrot.slane %v1040_v11, 6 }
 0xcb7   :  { %v1046_v13 = vsel %vm80_vm0, %v1020_v9, %v1045_v12 }
 0xcb8   :  { %v1048_v14 = vadd.f32 %v1658_v10, %v1046_v13 }
 0xcba   :  { %1108 = vrot.lane.b32.xlu0 %v1048_v14, %s1947_s24  ;;  %1811 = vtanh.f32 %v1048_v14  ;;  %v1661_v50 = vmul.f32 -1.442695, %v1048_v14  ;;  %v1087_v17 = vrot.slane %v1048_v14, 2 }
 0xcbc   :  { %1813 = vpow2.f32 %v1661_v50  ;;  %v1662_v18 = vmul.f32 -1.442695, %v1087_v17 }
 0xcc0   :  { %v1812_v15 = vpop.eup %1811 }
 0xcc1   :  { %1071 = vrot.lane.b32.xlu1 %v1812_v15, %s1946_s23 }
 0xcc2   :  { %v1814_v53 = vpop.eup %1813 }
 0xcc3   :  { %v1052_v37 = vadd.f32 1.0, %v1814_v53 }
 0xcc5   :  { %1815 = vrcp.f32 %v1052_v37  ;;  %v1064_v6 = vand.u32 2147483648, %v1052_v37  ;;  %vm1058_vm4 = vweird.f32 %v1052_v37  ;;  %v1062_v59 = vand.u32 2147483647, %v1052_v37 }
 0xcc7   :  { %v1065_v55 = vor.u32 1.1754944e-38, %v1064_v6  ;;  %vm1063_vm6 = vcmp.eq.f32.partialorder %v1062_v59, 8.507059e+37 }
 0xcc9   :  { %1136 = vrot.lane.b32.xlu1 %v1048_v14, %s1948_s25 }
 0xccb   :  { %v1816_v0 = vpop.eup %1815 }
 0xccc   :  { %v1054_v1 = vmul.f32 %v1816_v0, %v1052_v37  ;;  %vm1059_vm1 = vweird.f32 %v1816_v0 }
 0xccd   :  { %vm1060_vm5 = vmor %vm1058_vm4, %vm1059_vm1 }
 0xcce   :  { %v1055_v2 = vsub.f32 1.0, %v1054_v1 }
 0xcd0   :  { %v1056_v3 = vmul.f32 %v1816_v0, %v1055_v2 }
 0xcd2   :  { %v1057_v4 = vadd.f32 %v1816_v0, %v1056_v3 }
 0xcd4   :  { %v1061_v7 = vsel %vm1060_vm5, %v1816_v0, %v1057_v4 }
 0xcd5   :  { %v2370_v56 = vsel %vm1063_vm6, %v1065_v55, %v1061_v7 }
 0xcd6   :  { %v1069_v58 = vmul.f32 %v2370_v56, %v2345_v42 }
 0xd2c   :  { %v1109_v63 = vpop.permute.xlu0 %1108 }
 0xd2d   :  { %v1110_v20 = vrot.slane %v1109_v63, 2 }
 0xd2f   :  { %v1663_v19 = vmul.f32 -1.442695, %v1110_v20 }
 0xd33   :  { %v1072_v5 = vpop.permute.xlu1 %1071 }
 0xd34   :  { %v1074_v57 = vmul.f32 %v1072_v5, %v2370_v56 }
 0xd36   :  { %1076 = vrot.lane.b32.xlu2 %v1074_v57, %s1948_s25 }
 0xd3b   :  { %v1137_v34 = vpop.permute.xlu1 %1136 }
 0xd3c   :  { %v1138_v26 = vrot.slane %v1137_v34, 2 }
 0xd3e   :  { %1131 = vrot.lane.b32.xlu2 %v1048_v14, %s1946_s23  ;;  %v1664_v27 = vmul.f32 -1.442695, %v1138_v26 }
 0xd90   :  { %v1077_v60 = vpop.permute.xlu2 %1076 }
 0xd91   :  { %v2377_v61 = vadd.f32 %v1077_v60, %v1069_v58 }
 0xd93   :  { %1817 = vtanh.f32 %v2377_v61 }
 0xd94   :  { %1819 = vpow2.f32 %v1662_v18 }
 0xd95   :  { %1821 = vpow2.f32 %v1663_v19 }
 0xd98   :  { %v1132_v29 = vpop.permute.xlu2 %1131 }
 0xd99   :  { %v1818_v62 = vpop.eup %1817  ;;  %v1133_v43 = vrot.slane %v1132_v29, 2 }
 0xd9a   :  { %1082 = vrot.lane.b32.xlu0 %v1818_v62, %s1946_s23  ;;  %v1820_v21 = vpop.eup %1819 }
 0xd9b   :  { %v1822_v22 = vpop.eup %1821  ;;  %v1092_v23 = vadd.f32 1.0, %v1820_v21 }
 0xd9c   :  { %v1115_v42 = vadd.f32 1.0, %v1822_v22 }
 0xd9d   :  { %1823 = vrcp.f32 %v1092_v23  ;;  %vm1098_vm9 = vweird.f32 %v1092_v23  ;;  %v1104_v11 = vand.u32 2147483648, %v1092_v23  ;;  %v1102_v12 = vand.u32 2147483647, %v1092_v23 }
 0xd9e   :  { %1825 = vrcp.f32 %v1115_v42  ;;  %v1127_v49 = vand.u32 2147483648, %v1115_v42  ;;  %vm1121_vm10 = vweird.f32 %v1115_v42  ;;  %v1125_v9 = vand.u32 2147483647, %v1115_v42 }
 0xd9f   :  { %1827 = vpow2.f32 %v1664_v27  ;;  %v1105_v37 = vor.u32 1.1754944e-38, %v1104_v11  ;;  %vm1103_vm13 = vcmp.eq.f32.partialorder %v1102_v12, 8.507059e+37 }
 0xda0   :  { %v1128_v50 = vor.u32 1.1754944e-38, %v1127_v49  ;;  %vm1126_vm14 = vcmp.eq.f32.partialorder %v1125_v9, 8.507059e+37 }
 0xda3   :  { %v1824_v28 = vpop.eup %1823 }
 0xda4   :  { %v1826_v30 = vpop.eup %1825  ;;  %v1094_v33 = vmul.f32 %v1824_v28, %v1092_v23  ;;  %vm1099_vm7 = vweird.f32 %v1824_v28 }
 0xda5   :  { %v1117_v31 = vmul.f32 %v1826_v30, %v1115_v42  ;;  %v1828_v32 = vpop.eup %1827  ;;  %vm1122_vm8 = vweird.f32 %v1826_v30  ;;  %vm1100_vm11 = vmor %vm1098_vm9, %vm1099_vm7  ;;  %v1667_v42 = vld [vmem:[%s2558_s0 + $0x18] sm:$0xf] }
 0xda6   :  { %v1143_v39 = vadd.f32 1.0, %v1828_v32  ;;  %v1095_v40 = vsub.f32 1.0, %v1094_v33  ;;  %vm1123_vm12 = vmor %vm1121_vm10, %vm1122_vm8 }
 0xda7   :  { %v1118_v36 = vsub.f32 1.0, %v1117_v31 }
 0xda8   :  { %1829 = vrcp.f32 %v1143_v39  ;;  %v1096_v35 = vmul.f32 %v1824_v28, %v1095_v40  ;;  %v1155_v57 = vand.u32 2147483648, %v1143_v39  ;;  %vm1149_vm1 = vweird.f32 %v1143_v39 }
 0xda9   :  { %v1119_v46 = vmul.f32 %v1826_v30, %v1118_v36  ;;  %1831 = vtanh.f32 %v1133_v43  ;;  %v1153_v58 = vand.u32 2147483647, %v1143_v39 }
 0xdaa   :  { %v1097_v38 = vadd.f32 %v1824_v28, %v1096_v35  ;;  %v1156_v63 = vor.u32 1.1754944e-38, %v1155_v57 }
 0xdab   :  { %v1120_v41 = vadd.f32 %v1826_v30, %v1119_v46  ;;  %vm1154_vm5 = vcmp.eq.f32.partialorder %v1153_v58, 8.507059e+37 }
 0xdac   :  { %v1101_v13 = vsel %vm1100_vm11, %v1824_v28, %v1097_v38 }
 0xdad   :  { %v1124_v14 = vsel %vm1123_vm12, %v1826_v30, %v1120_v41  ;;  %v1106_v0 = vsel %vm1103_vm13, %v1105_v37, %v1101_v13 }
 0xdae   :  { %v1830_v10 = vpop.eup %1829  ;;  %v1129_v1 = vsel %vm1126_vm14, %v1128_v50, %v1124_v14 }
 0xdaf   :  { %v1832_v15 = vpop.eup %1831  ;;  %v1145_v53 = vmul.f32 %v1830_v10, %v1143_v39  ;;  %v1159_v4 = vmul.f32 %v1129_v1, %v2350_v16  ;;  %vm1150_vm15 = vweird.f32 %v1830_v10 }
 0xdb0   :  { %v1160_v2 = vmul.f32 %v1832_v15, %v1106_v0  ;;  %vm1151_vm4 = vmor %vm1149_vm1, %vm1150_vm15 }
 0xdb1   :  { %v1146_v3 = vsub.f32 1.0, %v1145_v53 }
 0xdb2   :  { %v2382_v6 = vadd.f32 %v1160_v2, %v1159_v4 }
 0xdb3   :  { %v1147_v59 = vmul.f32 %v1830_v10, %v1146_v3 }
 0xdb4   :  { %1833 = vtanh.f32 %v2382_v6 }
 0xdb5   :  { %v1148_v55 = vadd.f32 %v1830_v10, %v1147_v59 }
 0xdb7   :  { %v1152_v60 = vsel %vm1151_vm4, %v1830_v10, %v1148_v55 }
 0xdb8   :  { %v1157_v16 = vsel %vm1154_vm5, %v1156_v63, %v1152_v60 }
 0xdba   :  { %v1834_v62 = vpop.eup %1833 }
 0xdbb   :  { %v1163_v17 = vmul.f32 %v1834_v62, %v1157_v16 }
 0xe0c   :  { %v1083_v7 = vpop.permute.xlu0 %1082 }
 0xe0d   :  { %v1085_v5 = vmul.f32 %v1083_v7, %v2370_v56 }
 0xe0f   :  { %1165 = vst [vmem:[#allocation1] ss:$4 sm:$0xff] %v1085_v5 }
 0xe16   :  { %v2386_v20 = vld.sshfl [vmem:[#allocation1] sm:$0xff pattern:$0x73625140] }
 0xe17   :  { %1172 = vst [vmem:[#allocation1] ss:$4 sm:$0xff] %v1163_v17 }
 0xe1e   :  { %v2388_v18 = vld.sshfl [vmem:[#allocation1] sm:$0xff pattern:$0x73625140] }
 0xe1f   :  { %1178 = vst [vmem:[#allocation1] ss:$4 sm:$0xff] %v1085_v5 }
 0xe26   :  { %v1179_v19 = vld.sshfl [vmem:[#allocation1] sm:$0xff pattern:$0x73625140] }
 0xe27   :  { %1180 = vrot.lane.b32.xlu1 %v1179_v19, %s1948_s25  ;;  %1183 = vst [vmem:[#allocation1] ss:$4 sm:$0xff] %v1163_v17 }
 0xe2e   :  { %v1184_v56 = vld.sshfl [vmem:[#allocation1] sm:$0xff pattern:$0x73625140] }
 0xe2f   :  { %1185 = vrot.lane.b32.xlu2 %v1184_v56, %s1948_s25 }
 0xe89   :  { %v1186_v21 = vpop.permute.xlu2 %1185 }
 0xe99   :  { %v1181_v22 = vpop.permute.xlu1 %1180 }
 0xe9a   :  { %v1188_v34 = vsel %vm226_vm2, %v1181_v22, %v1186_v21 }
 0xe9b   :  { %1668 = vmatmul.msk.f32.vlgmr.msrb.gmra.mxu0 %vm33_vm3, %v1188_v34  ;;  %1669 = vmatmul.msk.f32.vlgmr.msrb.gmra.mxu1 %vm33_vm3, %v1188_v34 }
 0xf18   :  { %v1231_v23 = vpop.f32.mrf.mxu1  ;;  %v1211_v27 = vpop.f32.mrf.mxu0 }
 0xf19   :  { %v1236_v26 = vrot.slane %v1231_v23, 6 }
 0xf1b   :  { %v1237_v28 = vsel %vm80_vm0, %v1211_v27, %v1236_v26 }
 0xf1c   :  { %v1239_v30 = vadd.f32 %v1667_v42, %v1237_v28 }
 0xf1e   :  { %1299 = vrot.lane.b32.xlu2 %v1239_v30, %s1947_s24  ;;  %1835 = vtanh.f32 %v1239_v30  ;;  %v1670_v33 = vmul.f32 -1.442695, %v1239_v30  ;;  %v1278_v53 = vrot.slane %v1239_v30, 2 }
 0xf20   :  { %1837 = vpow2.f32 %v1670_v33  ;;  %v1671_v0 = vmul.f32 -1.442695, %v1278_v53 }
 0xf24   :  { %v1836_v31 = vpop.eup %1835 }
 0xf25   :  { %1262 = vrot.lane.b32.xlu0 %v1836_v31, %s1946_s23 }
 0xf26   :  { %v1838_v32 = vpop.eup %1837 }
 0xf27   :  { %v1243_v36 = vadd.f32 1.0, %v1838_v32 }
 0xf29   :  { %1839 = vrcp.f32 %v1243_v36  ;;  %v1255_v35 = vand.u32 2147483648, %v1243_v36  ;;  %vm1249_vm7 = vweird.f32 %v1243_v36  ;;  %v1253_v38 = vand.u32 2147483647, %v1243_v36 }
 0xf2b   :  { %v1256_v49 = vor.u32 1.1754944e-38, %v1255_v35  ;;  %vm1254_vm9 = vcmp.eq.f32.partialorder %v1253_v38, 8.507059e+37 }
 0xf2d   :  { %1327 = vrot.lane.b32.xlu0 %v1239_v30, %s1948_s25 }
 0xf2f   :  { %v1840_v39 = vpop.eup %1839 }
 0xf30   :  { %v1245_v40 = vmul.f32 %v1840_v39, %v1243_v36  ;;  %vm1250_vm6 = vweird.f32 %v1840_v39 }
 0xf31   :  { %vm1251_vm8 = vmor %vm1249_vm7, %vm1250_vm6 }
 0xf32   :  { %v1246_v29 = vsub.f32 1.0, %v1245_v40 }
 0xf34   :  { %v1247_v43 = vmul.f32 %v1840_v39, %v1246_v29 }
 0xf36   :  { %v1248_v46 = vadd.f32 %v1840_v39, %v1247_v43 }
 0xf38   :  { %v1252_v41 = vsel %vm1251_vm8, %v1840_v39, %v1248_v46 }
 0xf39   :  { %v2402_v10 = vsel %vm1254_vm9, %v1256_v49, %v1252_v41 }
 0xf3a   :  { %v1260_v9 = vmul.f32 %v2402_v10, %v2377_v61 }
 0xf78   :  { %v1300_v50 = vpop.permute.xlu2 %1299 }
 0xf79   :  { %v1301_v37 = vrot.slane %v1300_v50, 2 }
 0xf7b   :  { %v1672_v1 = vmul.f32 -1.442695, %v1301_v37 }
 0xf97   :  { %v1263_v11 = vpop.permute.xlu0 %1262 }
 0xf98   :  { %v1265_v12 = vmul.f32 %v1263_v11, %v2402_v10 }
 0xf9a   :  { %1267 = vrot.lane.b32.xlu1 %v1265_v12, %s1948_s25 }
 0xf9f   :  { %v1328_v4 = vpop.permute.xlu0 %1327 }
 0xfa0   :  { %v1329_v7 = vrot.slane %v1328_v4, 2 }
 0xfa2   :  { %1322 = vrot.lane.b32.xlu1 %v1239_v30, %s1946_s23  ;;  %v1673_v55 = vmul.f32 -1.442695, %v1329_v7 }
0x100c   :  { %v1268_v13 = vpop.permute.xlu1 %1267 }
0x100d   :  { %v2409_v14 = vadd.f32 %v1268_v13, %v1260_v9 }
0x100f   :  { %1841 = vtanh.f32 %v2409_v14 }
0x1010   :  { %1843 = vpow2.f32 %v1671_v0 }
0x1011   :  { %1845 = vpow2.f32 %v1672_v1 }
0x1014   :  { %v1323_v19 = vpop.permute.xlu1 %1322 }
0x1015   :  { %v1842_v15 = vpop.eup %1841  ;;  %v1324_v56 = vrot.slane %v1323_v19, 2 }
0x1016   :  { %1273 = vrot.lane.b32.xlu2 %v1842_v15, %s1946_s23  ;;  %v1844_v2 = vpop.eup %1843 }
0x1017   :  { %v1846_v3 = vpop.eup %1845  ;;  %v1283_v59 = vadd.f32 1.0, %v1844_v2 }
0x1018   :  { %v1306_v61 = vadd.f32 1.0, %v1846_v3 }
0x1019   :  { %1847 = vrcp.f32 %v1283_v59  ;;  %vm1289_vm12 = vweird.f32 %v1283_v59  ;;  %v1295_v26 = vand.u32 2147483648, %v1283_v59  ;;  %v1293_v28 = vand.u32 2147483647, %v1283_v59 }
0x101a   :  { %1849 = vrcp.f32 %v1306_v61  ;;  %v1318_v42 = vand.u32 2147483648, %v1306_v61  ;;  %vm1312_vm13 = vweird.f32 %v1306_v61  ;;  %v1316_v30 = vand.u32 2147483647, %v1306_v61 }
0x101b   :  { %1851 = vpow2.f32 %v1673_v55  ;;  %v1296_v40 = vor.u32 1.1754944e-38, %v1295_v26  ;;  %vm1294_vm1 = vcmp.eq.f32.partialorder %v1293_v28, 8.507059e+37  ;;  %v1676_v55 = vld [vmem:[%s2558_s0 + $0x1c] sm:$0xf]  ;;  %s1949_s0 = smov [#allocation4]  }
0x101c   :  { %v1319_v36 = vor.u32 1.1754944e-38, %v1318_v42  ;;  %vm1317_vm4 = vcmp.eq.f32.partialorder %v1316_v30, 8.507059e+37  ;;  %s1596_s10 = sshll.u32 %s1949_s0, 4  ;;  %s1597_s10 = int_to_ptr.vmem [resolvable:$true] %s1596_s10 }
0x101f   :  { %v1848_v5 = vpop.eup %1847 }
0x1020   :  { %v1850_v57 = vpop.eup %1849  ;;  %v1285_v60 = vmul.f32 %v1848_v5, %v1283_v59  ;;  %vm1290_vm10 = vweird.f32 %v1848_v5 }
0x1021   :  { %v1308_v58 = vmul.f32 %v1850_v57, %v1306_v61  ;;  %v1852_v62 = vpop.eup %1851  ;;  %vm1313_vm11 = vweird.f32 %v1850_v57  ;;  %vm1291_vm14 = vmor %vm1289_vm12, %vm1290_vm10  ;;  %vm205_vm10 = vcmask 254976  }
0x1022   :  { %v1334_v16 = vadd.f32 1.0, %v1852_v62  ;;  %v1286_v17 = vsub.f32 1.0, %v1285_v60  ;;  %vm1314_vm15 = vmor %vm1312_vm13, %vm1313_vm11  ;;  %vm214_vm11 = vcmask 517376  }
0x1023   :  { %v1309_v63 = vsub.f32 1.0, %v1308_v58 }
0x1024   :  { %1853 = vrcp.f32 %v1334_v16  ;;  %v1287_v22 = vmul.f32 %v1848_v5, %v1286_v17  ;;  %v1346_v13 = vand.u32 2147483648, %v1334_v16  ;;  %vm1340_vm6 = vweird.f32 %v1334_v16 }
0x1025   :  { %v1310_v21 = vmul.f32 %v1850_v57, %v1309_v63  ;;  %1855 = vtanh.f32 %v1324_v56  ;;  %v1344_v15 = vand.u32 2147483647, %v1334_v16 }
0x1026   :  { %v1288_v34 = vadd.f32 %v1848_v5, %v1287_v22  ;;  %v1347_v37 = vor.u32 1.1754944e-38, %v1346_v13 }
0x1027   :  { %v1311_v23 = vadd.f32 %v1850_v57, %v1310_v21  ;;  %vm1345_vm8 = vcmp.eq.f32.partialorder %v1344_v15, 8.507059e+37 }
0x1028   :  { %v1292_v31 = vsel %vm1291_vm14, %v1848_v5, %v1288_v34 }
0x1029   :  { %v1315_v33 = vsel %vm1314_vm15, %v1850_v57, %v1311_v23  ;;  %v1297_v29 = vsel %vm1294_vm1, %v1296_v40, %v1292_v31 }
0x102a   :  { %v1854_v27 = vpop.eup %1853  ;;  %v1320_v43 = vsel %vm1317_vm4, %v1319_v36, %v1315_v33 }
0x102b   :  { %v1856_v32 = vpop.eup %1855  ;;  %v1336_v39 = vmul.f32 %v1854_v27, %v1334_v16  ;;  %v1350_v38 = vmul.f32 %v1320_v43, %v2382_v6  ;;  %vm1341_vm5 = vweird.f32 %v1854_v27 }
0x102c   :  { %v1351_v46 = vmul.f32 %v1856_v32, %v1297_v29  ;;  %vm1342_vm7 = vmor %vm1340_vm6, %vm1341_vm5 }
0x102d   :  { %v1337_v35 = vsub.f32 1.0, %v1336_v39 }
0x102e   :  { %v2414_v41 = vadd.f32 %v1351_v46, %v1350_v38 }
0x102f   :  { %v1338_v49 = vmul.f32 %v1854_v27, %v1337_v35 }
0x1030   :  { %1857 = vtanh.f32 %v2414_v41 }
0x1031   :  { %v1339_v12 = vadd.f32 %v1854_v27, %v1338_v49 }
0x1033   :  { %v1343_v50 = vsel %vm1342_vm7, %v1854_v27, %v1339_v12 }
0x1034   :  { %v1348_v6 = vsel %vm1345_vm8, %v1347_v37, %v1343_v50 }
0x1036   :  { %v1858_v53 = vpop.eup %1857 }
0x1037   :  { %v1354_v0 = vmul.f32 %v1858_v53, %v1348_v6 }
0x1070   :  { %v1274_v11 = vpop.permute.xlu2 %1273 }
0x1071   :  { %v1276_v9 = vmul.f32 %v1274_v11, %v2402_v10 }
0x1073   :  { %1356 = vst [vmem:[#allocation1] ss:$4 sm:$0xff] %v1276_v9 }
0x107a   :  { %v2418_v1 = vld.sshfl [vmem:[#allocation1] sm:$0xff pattern:$0x73625140] }
0x107b   :  { %1363 = vst [vmem:[#allocation1] ss:$4 sm:$0xff] %v1354_v0 }
0x1082   :  { %v2420_v2 = vld.sshfl [vmem:[#allocation1] sm:$0xff pattern:$0x73625140] }
0x1083   :  { %1369 = vst [vmem:[#allocation1] ss:$4 sm:$0xff] %v1276_v9 }
0x108a   :  { %v1370_v3 = vld.sshfl [vmem:[#allocation1] sm:$0xff pattern:$0x73625140] }
0x108b   :  { %1371 = vrot.lane.b32.xlu0 %v1370_v3, %s1948_s25  ;;  %1374 = vst [vmem:[#allocation1] ss:$4 sm:$0xff] %v1354_v0 }
0x1092   :  { %v1375_v10 = vld.sshfl [vmem:[#allocation1] sm:$0xff pattern:$0x73625140] }
0x1093   :  { %1376 = vrot.lane.b32.xlu1 %v1375_v10, %s1948_s25 }
0x10fd   :  { %v1372_v4 = vpop.permute.xlu0 %1371 }
0x1105   :  { %v1377_v59 = vpop.permute.xlu1 %1376 }
0x1106   :  { %v1379_v61 = vsel %vm226_vm2, %v1372_v4, %v1377_v59 }
0x1107   :  { %1677 = vmatmul.msk.f32.vlgmr.msrb.gmra.mxu2 %vm33_vm3, %v1379_v61  ;;  %1678 = vmatmul.msk.f32.vlgmr.msrb.gmra.mxu3 %vm33_vm3, %v1379_v61 }
0x118a   :  { %v1422_v7 = vpop.f32.mrf.mxu3  ;;  %v1402_v57 = vpop.f32.mrf.mxu2 }
0x118b   :  { %v1427_v5 = vrot.slane %v1422_v7, 6 }
0x118d   :  { %v1428_v58 = vsel %vm80_vm0, %v1402_v57, %v1427_v5 }
0x118e   :  { %v1430_v60 = vadd.f32 %v1676_v55, %v1428_v58 }
0x1190   :  { %1490 = vrot.lane.b32.xlu1 %v1430_v60, %s1947_s24  ;;  %1859 = vtanh.f32 %v1430_v60  ;;  %v1679_v63 = vmul.f32 -1.442695, %v1430_v60  ;;  %v1469_v32 = vrot.slane %v1430_v60, 2 }
0x1192   :  { %1861 = vpow2.f32 %v1679_v63 }
0x1196   :  { %v1860_v62 = vpop.eup %1859 }
0x1197   :  { %1453 = vrot.lane.b32.xlu2 %v1860_v62, %s1946_s23 }
0x1198   :  { %v1862_v16 = vpop.eup %1861 }
0x1199   :  { %v1434_v17 = vadd.f32 1.0, %v1862_v16 }
0x119b   :  { %1863 = vrcp.f32 %v1434_v17  ;;  %vm1440_vm2 = vweird.f32 %v1434_v17 }
0x119f   :  { %1518 = vrot.lane.b32.xlu2 %v1430_v60, %s1948_s25 }
0x11a1   :  { %v1864_v19 = vpop.eup %1863 }
0x11a2   :  { %v1436_v56 = vmul.f32 %v1864_v19, %v1434_v17  ;;  %vm1441_vm0 = vweird.f32 %v1864_v19 }
0x11a3   :  { %vm1442_vm3 = vmor %vm1440_vm2, %vm1441_vm0 }
0x11a4   :  { %v1437_v21 = vsub.f32 1.0, %v1436_v56 }
0x11a6   :  { %v1438_v22 = vmul.f32 %v1864_v19, %v1437_v21 }
0x11a7   :  { %202 = vrot.lane.b32.xlu2 %v2158_v51, %s1948_s25  ;;  %v1446_v51 = vand.u32 2147483648, %v1434_v17 }
0x11a8   :  { %v1439_v34 = vadd.f32 %v1864_v19, %v1438_v22 }
0x11aa   :  { %v1443_v23 = vsel %vm1442_vm3, %v1864_v19, %v1439_v34 }
0x11af   :  { %405 = vrot.lane.b32.xlu2 %v2208_v48, %s1948_s25  ;;  %v1444_v48 = vand.u32 2147483647, %v1434_v17 }
0x11b1   :  { %vm1445_vm9 = vcmp.eq.f32.partialorder %v1444_v48, 8.507059e+37 }
0x11b7   :  { %783 = vrot.lane.b32.xlu2 %v2322_v8, %s1948_s25  ;;  %v1447_v8 = vor.u32 1.1754944e-38, %v1446_v51 }
0x11bf   :  { %1167 = vrot.lane.b32.xlu2 %v2386_v20, %s1948_s25  ;;  %v2442_v20 = vsel %vm1445_vm9, %v1447_v8, %v1443_v23 }
0x11c0   :  { %v1451_v12 = vmul.f32 %v2442_v20, %v2409_v14 }
0x11f1   :  { %v1454_v42 = vpop.permute.xlu2 %1453 }
0x11f2   :  { %v1456_v26 = vmul.f32 %v1454_v42, %v2442_v20 }
0x11f4   :  { %1458 = vrot.lane.b32.xlu0 %v1456_v26, %s1948_s25 }
0x11f9   :  { %v1519_v27 = vpop.permute.xlu2 %1518 }
0x11fa   :  { %v1520_v39 = vrot.slane %v1519_v27, 2 }
0x11fc   :  { %1513 = vrot.lane.b32.xlu0 %v1430_v60, %s1946_s23  ;;  %v1682_v43 = vmul.f32 -1.442695, %v1520_v39 }
0x1201   :  { %v203_v28 = vpop.permute.xlu2 %202 }
0x1202   :  { %206 = vst.msk [vmem:[%s2560_s2] sm:$0x3] %vm205_vm10, %v203_v28 }
0x1204   :  { %210 = vrot.lane.b32.xlu0 %v2160_v52, %s1948_s25  ;;  %v1491_v52 = vpop.permute.xlu1 %1490 }
0x1205   :  { %v1492_v33 = vrot.slane %v1491_v52, 2 }
0x1207   :  { %v1681_v36 = vmul.f32 -1.442695, %v1492_v33 }
0x1209   :  { %v406_v30 = vpop.permute.xlu2 %405  ;;  %1865 = vpow2.f32 %v1681_v36 }
0x120a   :  { %1630 = vst.msk [vmem:[%s2560_s2 + $0xc] sm:$0x3] %vm214_vm11, %v406_v30 }
0x120c   :  { %590 = vrot.lane.b32.xlu0 %v2254_v24, %s1948_s25  ;;  %v1680_v24 = vmul.f32 -1.442695, %v1469_v32 }
0x120e   :  { %1867 = vpow2.f32 %v1680_v24 }
0x120f   :  { %v1866_v40 = vpop.eup %1865  ;;  %1869 = vpow2.f32 %v1682_v43 }
0x1210   :  { %v1497_v46 = vadd.f32 1.0, %v1866_v40 }
0x1211   :  { %v784_v31 = vpop.permute.xlu2 %783 }
0x1212   :  { %1647 = vst.msk [vmem:[%s2560_s2 + $0x6] sm:$0x3] %vm205_vm10, %v784_v31  ;;  %1871 = vrcp.f32 %v1497_v46  ;;  %v1509_v59 = vand.u32 2147483648, %v1497_v46  ;;  %vm1503_vm13 = vweird.f32 %v1497_v46  ;;  %v1507_v7 = vand.u32 2147483647, %v1497_v46 }
0x1214   :  { %791 = vrot.lane.b32.xlu0 %v2324_v54, %s1948_s25  ;;  %v1868_v29 = vpop.eup %1867  ;;  %v1510_v60 = vor.u32 1.1754944e-38, %v1509_v59  ;;  %vm1508_vm5 = vcmp.eq.f32.partialorder %v1507_v7, 8.507059e+37 }
0x1215   :  { %v1474_v35 = vadd.f32 1.0, %v1868_v29  ;;  %v1870_v54 = vpop.eup %1869 }
0x1217   :  { %1873 = vrcp.f32 %v1474_v35  ;;  %v1486_v55 = vand.u32 2147483648, %v1474_v35  ;;  %vm1480_vm1 = vweird.f32 %v1474_v35  ;;  %v1484_v5 = vand.u32 2147483647, %v1474_v35 }
0x1219   :  { %v1487_v63 = vor.u32 1.1754944e-38, %v1486_v55  ;;  %vm1485_vm6 = vcmp.eq.f32.partialorder %v1484_v5, 8.507059e+37  ;;  %v1168_v36 = vpop.permute.xlu2 %1167 }
0x121c   :  { %976 = vrot.lane.b32.xlu0 %v2354_v44, %s1948_s25  ;;  %v1872_v44 = vpop.eup %1871 }
0x121d   :  { %v1874_v38 = vpop.eup %1873  ;;  %v1499_v49 = vmul.f32 %v1872_v44, %v1497_v46  ;;  %vm1504_vm12 = vweird.f32 %v1872_v44 }
0x121e   :  { %v1476_v11 = vmul.f32 %v1874_v38, %v1474_v35  ;;  %vm1481_vm14 = vweird.f32 %v1874_v38  ;;  %vm1505_vm15 = vmor %vm1503_vm13, %vm1504_vm12 }
0x121f   :  { %v1500_v9 = vsub.f32 1.0, %v1499_v49  ;;  %vm1482_vm4 = vmor %vm1480_vm1, %vm1481_vm14 }
0x1220   :  { %v1477_v50 = vsub.f32 1.0, %v1476_v11 }
0x1221   :  { %v1501_v53 = vmul.f32 %v1872_v44, %v1500_v9 }
0x1222   :  { %v1478_v6 = vmul.f32 %v1874_v38, %v1477_v50 }
0x1223   :  { %v1502_v0 = vadd.f32 %v1872_v44, %v1501_v53 }
0x1224   :  { %1174 = vrot.lane.b32.xlu0 %v2388_v18, %s1948_s25  ;;  %v1525_v18 = vadd.f32 1.0, %v1870_v54  ;;  %v1479_v14 = vadd.f32 %v1874_v38, %v1478_v6 }
0x1225   :  { %v1506_v57 = vsel %vm1505_vm15, %v1872_v44, %v1502_v0 }
0x1226   :  { %1875 = vrcp.f32 %v1525_v18  ;;  %v1483_v62 = vsel %vm1482_vm4, %v1874_v38, %v1479_v14  ;;  %v1511_v16 = vsel %vm1508_vm5, %v1510_v60, %v1506_v57  ;;  %v1537_v23 = vand.u32 2147483648, %v1525_v18 }
0x1227   :  { %v1488_v21 = vsel %vm1485_vm6, %v1487_v63, %v1483_v62  ;;  %v1541_v22 = vmul.f32 %v1511_v16, %v2414_v41  ;;  %vm1531_vm8 = vweird.f32 %v1525_v18  ;;  %v1535_v8 = vand.u32 2147483647, %v1525_v18 }
0x1228   :  { %v1538_v41 = vor.u32 1.1754944e-38, %v1537_v23 }
0x1229   :  { %vm1536_vm2 = vcmp.eq.f32.partialorder %v1535_v8, 8.507059e+37 }
0x122c   :  { %v1876_v37 = vpop.eup %1875 }
0x122d   :  { %v1527_v4 = vmul.f32 %v1876_v37, %v1525_v18  ;;  %vm1532_vm7 = vweird.f32 %v1876_v37 }
0x122e   :  { %vm1533_vm0 = vmor %vm1531_vm8, %vm1532_vm7 }
0x122f   :  { %v1528_v58 = vsub.f32 1.0, %v1527_v4 }
0x1231   :  { %v1529_v56 = vmul.f32 %v1876_v37, %v1528_v58 }
0x1233   :  { %v1530_v48 = vadd.f32 %v1876_v37, %v1529_v56 }
0x1235   :  { %v1534_v26 = vsel %vm1533_vm0, %v1876_v37, %v1530_v48 }
0x1236   :  { %v1539_v27 = vsel %vm1536_vm2, %v1538_v41, %v1534_v26 }
0x1266   :  { %v1459_v13 = vpop.permute.xlu0 %1458 }
0x1267   :  { %v2471_v15 = vadd.f32 %v1459_v13, %v1451_v12 }
0x1269   :  { %1877 = vtanh.f32 %v2471_v15 }
0x126e   :  { %v1514_v3 = vpop.permute.xlu0 %1513 }
0x126f   :  { %v1878_v10 = vpop.eup %1877  ;;  %v1515_v61 = vrot.slane %v1514_v3, 2 }
0x1270   :  { %1464 = vrot.lane.b32.xlu1 %v1878_v10, %s1946_s23 }
0x1271   :  { %1879 = vtanh.f32 %v1515_v61 }
0x1276   :  { %v211_v17 = vpop.permute.xlu0 %210 }
0x1277   :  { %v1880_v19 = vpop.eup %1879  ;;  %1621 = vst.msk [vmem:[%s2560_s2 + $0xe] sm:$0x3] %vm214_vm11, %v211_v17 }
0x1278   :  { %v1542_v34 = vmul.f32 %v1880_v19, %v1488_v21  ;;  %397 = vrot.lane.b32.xlu1 %v2206_v47, %s1948_s25 }
0x127a   :  { %v1543_v51 = vadd.f32 %v1542_v34, %v1541_v22 }
0x127c   :  { %1881 = vtanh.f32 %v1543_v51  ;;  %1576 = vst.msk [vmem:[#allocation4 + $0x2] sm:$0x3] %vm205_vm10, %v1543_v51 }
0x127e   :  { %v591_v42 = vpop.permute.xlu0 %590 }
0x127f   :  { %1638 = vst.msk [vmem:[%s2560_s2 + $0x4] sm:$0x3] %vm205_vm10, %v591_v42 }
0x1280   :  { %598 = vrot.lane.b32.xlu1 %v2256_v25, %s1948_s25 }
0x1282   :  { %v1882_v47 = vpop.eup %1881 }
0x1283   :  { %v1545_v28 = vmul.f32 %v1882_v47, %v1539_v27 }
0x1285   :  { %1567 = vst.msk [vmem:[#allocation2 + $0x2] sm:$0x3] %vm205_vm10, %v1545_v28 }
0x1286   :  { %v792_v30 = vpop.permute.xlu0 %791 }
0x1287   :  { %1648 = vst.msk [vmem:[%s2560_s2 + $0x8] sm:$0x3] %vm214_vm11, %v792_v30 }
0x1288   :  { %983 = vrot.lane.b32.xlu1 %v2356_v45, %s1948_s25 }
0x128e   :  { %v977_v31 = vpop.permute.xlu0 %976 }
0x128f   :  { %1656 = vst.msk [vmem:[%s2560_s2 + $0x8] sm:$0x3] %vm205_vm10, %v977_v31 }
0x1290   :  { %1358 = vrot.lane.b32.xlu1 %v2418_v1, %s1948_s25 }
0x1296   :  { %v1175_v25 = vpop.permute.xlu0 %1174 }
0x1297   :  { %1666 = vst.msk [vmem:[%s2560_s2 + $0x4] sm:$0x3] %vm214_vm11, %v1175_v25 }
0x12e2   :  { %v1465_v52 = vpop.permute.xlu1 %1464 }
0x12e3   :  { %v1467_v33 = vmul.f32 %v1465_v52, %v2442_v20 }
0x12e5   :  { %1547 = vst [vmem:[#allocation1] ss:$4 sm:$0xff] %v1467_v33 }
0x12ea   :  { %v398_v45 = vpop.permute.xlu1 %397 }
0x12eb   :  { %1629 = vst.msk [vmem:[%s2560_s2 + $0x2] sm:$0x3] %vm205_vm10, %v398_v45 }
0x12ec   :  { %v1548_v32 = vld.sshfl [vmem:[#allocation1] sm:$0xff pattern:$0x73625140] }
0x12ed   :  { %1549 = vrot.lane.b32.xlu0 %v1548_v32, %s1948_s25  ;;  %1554 = vst [vmem:[#allocation1] ss:$4 sm:$0xff] %v1545_v28 }
0x12f2   :  { %v599_v1 = vpop.permute.xlu1 %598 }
0x12f3   :  { %1639 = vst.msk [vmem:[%s2560_s2 + $0xa] sm:$0x3] %vm214_vm11, %v599_v1 }
0x12f4   :  { %1665 = vst.msk [vmem:[%s2560_s2 + $0xa] sm:$0x3] %vm205_vm10, %v1168_v36  ;;  %v1555_v20 = vld.sshfl [vmem:[#allocation1] sm:$0xff pattern:$0x73625140] }
0x12f5   :  { %1560 = vst [vmem:[#allocation1] ss:$4 sm:$0xff] %v1467_v33 }
0x12fa   :  { %v984_v24 = vpop.permute.xlu1 %983 }
0x12fb   :  { %1657 = vst.msk [vmem:[%s2560_s2 + $0x6] sm:$0x3] %vm214_vm11, %v984_v24 }
0x12fc   :  { %v1561_v39 = vld.sshfl [vmem:[#allocation1] sm:$0xff pattern:$0x73625140] }
0x12fd   :  { %1562 = vrot.lane.b32.xlu1 %v1561_v39, %s1948_s25  ;;  %1569 = vst [vmem:[#allocation1] ss:$4 sm:$0xff] %v2471_v15 }
0x1302   :  { %v1359_v40 = vpop.permute.xlu1 %1358 }
0x1303   :  { %1674 = vst.msk [vmem:[%s2560_s2 + $0xc] sm:$0x3] %vm205_vm10, %v1359_v40 }
0x1304   :  { %v1570_v29 = vld.sshfl [vmem:[#allocation1] sm:$0xff pattern:$0x73625140] }
0x1305   :  { %1556 = vrot.lane.b32.xlu1 %v1555_v20, %s1948_s25  ;;  %1571 = vrot.lane.b32.xlu2 %v1570_v29, %s1947_s24  ;;  %s1950_s24 = smov 2  }
0x130d   :  { %1365 = vrot.lane.b32.xlu2 %v2420_v2, %s1948_s25 }
0x135f   :  { %v1550_v43 = vpop.permute.xlu0 %1549  ;;  %v1572_v46 = vpop.permute.xlu2 %1571 }
0x1360   :  { %1683 = vst.msk [vmem:[%s2560_s2 + $0xe] sm:$0x3] %vm205_vm10, %v1550_v43 }
0x1361   :  { %1574 = vst.msk [vmem:[#allocation4] sm:$0x3] %vm205_vm10, %v1572_v46 }
0x1362   :  { %1604 = dma.vmem_to_hbm [thread:$0]  %s1597_s10, 64, %s1599_s13, [#allocation5], %s1948_s25, %s1948_s25, %s1950_s24  }
0x1367   :  { %v1366_v2 = vpop.permute.xlu2 %1365 }
0x1368   :  { %1675 = vst.msk [vmem:[%s2560_s2 + $0x2] sm:$0x3] %vm214_vm11, %v1366_v2 }
0x136f   :  { %v1563_v35 = vpop.permute.xlu1 %1562 }
0x1370   :  { %1565 = vst.msk [vmem:[#allocation2] sm:$0x3] %vm205_vm10, %v1563_v35 }
0x1371   :  { %1591 = dma.vmem_to_hbm [thread:$0]  %s1584_s17, 64, %s1586_s20, [#allocation3], %s1948_s25, %s1948_s25, %s1950_s24  }
0x1377   :  { %v1557_v54 = vpop.permute.xlu1 %1556 }
0x1378   :  { %1559 = vst.msk [vmem:[%s2560_s2] sm:$0x3] %vm214_vm11, %v1557_v54 }
0x1379   :  { %1941 = dma.done.wait [#allocation3], 64  }
0x137a   :  { %1942 = vsyncadd [#allocation3], 4294967232 }
0x137b   :  { %1943 = dma.done.wait [#allocation5], 64  }
0x137c   :  { %1944 = vsyncadd [#allocation5], 4294967232 }
0x137d   :  { %1615 = vsyncpa [#allocation3], 1 }
0x137e   :  { %1616 = vsyncpa [#allocation5], 1 }

</bundles_post_ra>
